<compile_context>
chip_gen: v5e
topology: v5e:2x2
jax: 0.10.0
libtpu: 0.0.40
codegen_flags: <defaults>
</compile_context>

<pallas_src>
import math
import random

import numpy as np
import jax
import jax.numpy as jnp
from jax import lax
from jax.experimental import pallas as pl
from jax.experimental.pallas import tpu as pltpu


# ----------------------------------------------------------------------------
# Glue: deterministic mirror of _build2dTransformMatrix (host-side RNG).
# ----------------------------------------------------------------------------
def build_2d_transform_matrix(flip=None, offset=None, scale=None, rotate=None,
                              seed=0):
    rng = random.Random(seed)
    t = np.eye(3, dtype=np.float64)
    for i in range(2):
        if flip:
            if rng.random() > 0.5:
                t[i, i] *= -1
        if offset:
            random_float = rng.random() * 2 - 1
            t[2, i] = offset * random_float
        if scale:
            random_float = rng.random() * 2 - 1
            t[i, i] *= 1.0 + scale * random_float
    if rotate:
        angle_rad = rng.random() * math.pi * 2
        s, c = math.sin(angle_rad), math.cos(angle_rad)
        rotation = np.array([[c, -s, 0.0], [s, c, 0.0], [0.0, 0.0, 1.0]])
        t = t @ rotation
    return jnp.asarray(t, dtype=jnp.float32)


# ----------------------------------------------------------------------------
# Tiling: rows of output pixels per grid step (lane-dense, VMEM-bounded slab).
# ----------------------------------------------------------------------------
def _pick_tile_rows(H, W, max_slab_bytes=4 << 20):
    HW = H * W
    divisors = [d for d in range(1, H + 1) if H % d == 0]
    # Lane width must be a multiple of 128 or the full flattened extent.
    legal = [d for d in divisors if d == H or (d * W) % 128 == 0]
    feasible = [d for d in legal if HW * d * W * 4 <= max_slab_bytes]
    if feasible:
        return max(feasible)
    return min(legal)


# ----------------------------------------------------------------------------
# Pallas kernel: per output-pixel tile, build the (HW_in, TILE) bilinear
# sampling slab from the batch-shared theta, then one fused MXU matmul.
# ----------------------------------------------------------------------------
def _make_kernel(H, W, tile_lanes):
    HW = H * W
    Wf = float(W)
    Hf = float(H)

    def kernel(theta_ref, lhs_ref, coord_ref, out_ref):
        t00 = theta_ref[0, 0]
        t01 = theta_ref[0, 1]
        t02 = theta_ref[0, 2]
        t10 = theta_ref[0, 3]
        t11 = theta_ref[0, 4]
        t12 = theta_ref[0, 5]

        # Precomputed normalized base grid coords for this output tile.
        x = coord_ref[0:1, :]            # (1, TILE)
        y = coord_ref[1:2, :]            # (1, TILE)

        xs = t00 * x + t01 * y + t02
        ys = t10 * x + t11 * y + t12

        # F.grid_sample, align_corners=False, padding_mode='border'.
        ix = jnp.clip(((xs + 1.0) * Wf - 1.0) * 0.5, 0.0, Wf - 1.0)
        iy = jnp.clip(((ys + 1.0) * Hf - 1.0) * 0.5, 0.0, Hf - 1.0)

        ix0f = jnp.floor(ix)
        iy0f = jnp.floor(iy)
        wx1 = ix - ix0f
        wy1 = iy - iy0f
        wx0 = 1.0 - wx1
        wy0 = 1.0 - wy1

        ix0 = ix0f.astype(jnp.int32)
        iy0 = iy0f.astype(jnp.int32)
        ix1 = jnp.minimum(ix0 + 1, W - 1)
        iy1 = jnp.minimum(iy0 + 1, H - 1)

        # One-hot scatter of the 4 bilinear corners into an (HW_in, TILE)
        # sampling slab; out_tile = lhs @ slab (single MXU matmul, batch +
        # image + label channels fused in the LHS).
        p = lax.broadcasted_iota(jnp.int32, (HW, tile_lanes), 0)

        def corner(iyc, ixc, wc):
            idx = iyc * W + ixc                  # (1, TILE) flat input index
            return jnp.where(p == idx, wc, 0.0)  # (HW, TILE)

        w_mat = (corner(iy0, ix0, wy0 * wx0)
                 + corner(iy0, ix1, wy0 * wx1)
                 + corner(iy1, ix0, wy1 * wx0)
                 + corner(iy1, ix1, wy1 * wx1))

        out_ref[...] = jnp.dot(
            lhs_ref[...], w_mat,
            preferred_element_type=jnp.float32).astype(out_ref.dtype)

    return kernel


def segmentation_augmentation_forward(input_g, label_g, transform_3x3):
    """input_g: (N, C, H, W) float32; label_g: (N, CL, H, W) any dtype.
    transform_3x3: (3, 3) float32 (from build_2d_transform_matrix)."""
    N, C, H, W = input_g.shape
    CL = label_g.shape[1]
    HW = H * W
    M = N * (C + CL)

    # F.affine_grid(transform_t[:, :2]) keeps the first two ROWS of the
    # batch-shared 3x3 (translation column stays 0 because the PyTorch module
    # writes offsets into row 2, which this slice drops — behaviour preserved).
    theta = transform_3x3[:2, :].reshape(1, 6).astype(jnp.float32)

    # Fuse batch + image channels + label channels into one LHS slab.
    lhs = jnp.concatenate(
        [input_g.astype(jnp.float32), label_g.astype(jnp.float32)], axis=1)
    lhs = lhs.reshape(M, HW)

    # Base normalized output-grid coordinates (align_corners=False), (2, HW).
    xs1d = (2.0 * jnp.arange(W, dtype=jnp.float32) + 1.0) / W - 1.0
    ys1d = (2.0 * jnp.arange(H, dtype=jnp.float32) + 1.0) / H - 1.0
    Xg, Yg = jnp.meshgrid(xs1d, ys1d)                             # (H, W)
    coords = jnp.stack([Xg.reshape(HW), Yg.reshape(HW)], axis=0)  # (2, HW)

    tile_rows = _pick_tile_rows(H, W)
    tile_lanes = tile_rows * W
    n_tiles = H // tile_rows

    # Scoped-VMEM budget: sampling slab + compiler temporaries + LHS + out.
    m_pad = ((M + 7) // 8) * 8
    slab_bytes = HW * tile_lanes * 4
    est = (6 * slab_bytes
           + 4 * m_pad * HW * 4
           + 4 * m_pad * tile_lanes * 4
           + 8 * tile_lanes * 4)
    vmem_limit = int(max(32 << 20, min(2 * est, 48 << 20)))

    kernel = _make_kernel(H, W, tile_lanes)

    out = pl.pallas_call(
        kernel,
        grid=(n_tiles,),
        in_specs=[
            pl.BlockSpec(memory_space=pltpu.MemorySpace.SMEM),   # theta (1, 6)
            pl.BlockSpec((M, HW), lambda t: (0, 0)),             # LHS, resident
            pl.BlockSpec((2, tile_lanes), lambda t: (0, t)),     # coord tile
        ],
        out_specs=pl.BlockSpec((M, tile_lanes), lambda t: (0, t)),
        out_shape=jax.ShapeDtypeStruct((M, HW), jnp.float32),
        compiler_params=pltpu.CompilerParams(
            dimension_semantics=("parallel",),
            vmem_limit_bytes=vmem_limit),
    )(theta, lhs, coords)

    out = out.reshape(N, C + CL, H, W)
    return out[:, :C], out[:, C:]


# ----------------------------------------------------------------------------
# Pure-JAX reference (same math, explicit gather) for a correctness check.
# ----------------------------------------------------------------------------
def _reference(input_g, label_g, transform_3x3):
    N, C, H, W = input_g.shape
    theta = transform_3x3[:2, :]
    x = (2.0 * jnp.arange(W, dtype=jnp.float32) + 1.0) / W - 1.0
    y = (2.0 * jnp.arange(H, dtype=jnp.float32) + 1.0) / H - 1.0
    X, Y = jnp.meshgrid(x, y)                       # (H, W)
    xs = theta[0, 0] * X + theta[0, 1] * Y + theta[0, 2]
    ys = theta[1, 0] * X + theta[1, 1] * Y + theta[1, 2]
    ix = jnp.clip(((xs + 1.0) * W - 1.0) * 0.5, 0.0, W - 1.0)
    iy = jnp.clip(((ys + 1.0) * H - 1.0) * 0.5, 0.0, H - 1.0)
    ix0f = jnp.floor(ix); iy0f = jnp.floor(iy)
    wx1 = ix - ix0f; wy1 = iy - iy0f
    ix0 = ix0f.astype(jnp.int32); iy0 = iy0f.astype(jnp.int32)
    ix1 = jnp.minimum(ix0 + 1, W - 1); iy1 = jnp.minimum(iy0 + 1, H - 1)

    def sample(img):
        img = img.astype(jnp.float32)
        g = lambda iyc, ixc: img[:, :, iyc, ixc]
        return (g(iy0, ix0) * ((1 - wy1) * (1 - wx1))
                + g(iy0, ix1) * ((1 - wy1) * wx1)
                + g(iy1, ix0) * (wy1 * (1 - wx1))
                + g(iy1, ix1) * (wy1 * wx1))

    return sample(input_g), sample(label_g)


if __name__ == "__main__":
    key = jax.random.PRNGKey(0)
    k1, k2 = jax.random.split(key)

    N, C, H, W = 2, 4, 16, 16
    input_g = jax.random.normal(k1, (N, C, H, W), dtype=jnp.float32)
    label_g = (jax.random.uniform(k2, (N, 1, H, W)) > 0.5)   # bool mask label

    transform = build_2d_transform_matrix(
        flip=True, offset=0.1, scale=0.2, rotate=True, seed=0)

    aug_input, aug_label = segmentation_augmentation_forward(
        input_g, label_g, transform)
    jax.block_until_ready((aug_input, aug_label))

    ref_input, ref_label = _reference(input_g, label_g, transform)
    assert aug_input.shape == (N, C, H, W) and aug_input.dtype == jnp.float32
    assert aug_label.shape == (N, 1, H, W) and aug_label.dtype == jnp.float32
    np.testing.assert_allclose(np.asarray(aug_input), np.asarray(ref_input),
                               rtol=1e-4, atol=1e-4)
    np.testing.assert_allclose(np.asarray(aug_label), np.asarray(ref_label),
                               rtol=1e-4, atol=1e-4)

    print("KERNEL_OK")
</pallas_src>

<mosaic_0001>
module attributes {stable_mosaic.version = 11 : i64} {
  func.func @kernel(%arg0: i32, %arg1: memref<1x6xf32, #tpu.memory_space<smem>>, %arg2: memref<10x256xf32, #tpu.memory_space<vmem>>, %arg3: memref<2x256xf32, #tpu.memory_space<vmem>>, %arg4: memref<10x256xf32, #tpu.memory_space<vmem>>) attributes {dimension_semantics = [#tpu.dimension_semantics<parallel>], iteration_bounds = array<i64: 1>, scalar_prefetch = 0 : i64, scratch_operands = 0 : i64, tpu.core_type = #tpu.core_type<tc>, window_params = [{transform_indices = @transform_0, window_bounds = array<i64: 1, 6>}, {pipeline_mode = #tpu.pipeline_mode<synchronous>, transform_indices = @transform_1, window_bounds = array<i64: 10, 256>}, {transform_indices = @transform_2, window_bounds = array<i64: 2, 256>}, {transform_indices = @transform_3, window_bounds = array<i64: 10, 256>}]} {
    %c0 = arith.constant 0 : index
    %c0_0 = arith.constant 0 : index
    %0 = memref.load %arg1[%c0, %c0_0] : memref<1x6xf32, #tpu.memory_space<smem>>
    %c0_1 = arith.constant 0 : index
    %c1 = arith.constant 1 : index
    %1 = memref.load %arg1[%c0_1, %c1] : memref<1x6xf32, #tpu.memory_space<smem>>
    %c0_2 = arith.constant 0 : index
    %c2 = arith.constant 2 : index
    %2 = memref.load %arg1[%c0_2, %c2] : memref<1x6xf32, #tpu.memory_space<smem>>
    %c0_3 = arith.constant 0 : index
    %c3 = arith.constant 3 : index
    %3 = memref.load %arg1[%c0_3, %c3] : memref<1x6xf32, #tpu.memory_space<smem>>
    %c0_4 = arith.constant 0 : index
    %c4 = arith.constant 4 : index
    %4 = memref.load %arg1[%c0_4, %c4] : memref<1x6xf32, #tpu.memory_space<smem>>
    %c0_5 = arith.constant 0 : index
    %c5 = arith.constant 5 : index
    %5 = memref.load %arg1[%c0_5, %c5] : memref<1x6xf32, #tpu.memory_space<smem>>
    %c0_6 = arith.constant 0 : index
    %c0_7 = arith.constant 0 : index
    %6 = vector.load %arg3[%c0_6, %c0_7] : memref<2x256xf32, #tpu.memory_space<vmem>>, vector<1x256xf32>
    %c1_8 = arith.constant 1 : index
    %c0_9 = arith.constant 0 : index
    %7 = vector.load %arg3[%c1_8, %c0_9] : memref<2x256xf32, #tpu.memory_space<vmem>>, vector<1x256xf32>
    %8 = vector.broadcast %0 : f32 to vector<1x256xf32>
    %9 = arith.mulf %8, %6 : vector<1x256xf32>
    %10 = vector.broadcast %1 : f32 to vector<1x256xf32>
    %11 = arith.mulf %10, %7 : vector<1x256xf32>
    %12 = arith.addf %9, %11 : vector<1x256xf32>
    %13 = vector.broadcast %2 : f32 to vector<1x256xf32>
    %14 = arith.addf %12, %13 : vector<1x256xf32>
    %15 = vector.broadcast %3 : f32 to vector<1x256xf32>
    %16 = arith.mulf %15, %6 : vector<1x256xf32>
    %17 = vector.broadcast %4 : f32 to vector<1x256xf32>
    %18 = arith.mulf %17, %7 : vector<1x256xf32>
    %19 = arith.addf %16, %18 : vector<1x256xf32>
    %20 = vector.broadcast %5 : f32 to vector<1x256xf32>
    %21 = arith.addf %19, %20 : vector<1x256xf32>
    %cst = arith.constant 1.000000e+00 : f32
    %22 = vector.broadcast %cst : f32 to vector<1x256xf32>
    %23 = arith.addf %14, %22 : vector<1x256xf32>
    %cst_10 = arith.constant 1.600000e+01 : f32
    %24 = vector.broadcast %cst_10 : f32 to vector<1x256xf32>
    %25 = arith.mulf %23, %24 : vector<1x256xf32>
    %cst_11 = arith.constant 1.000000e+00 : f32
    %26 = vector.broadcast %cst_11 : f32 to vector<1x256xf32>
    %27 = arith.subf %25, %26 : vector<1x256xf32>
    %cst_12 = arith.constant 5.000000e-01 : f32
    %28 = vector.broadcast %cst_12 : f32 to vector<1x256xf32>
    %29 = arith.mulf %27, %28 : vector<1x256xf32>
    %cst_13 = arith.constant 0.000000e+00 : f32
    %cst_14 = arith.constant 1.500000e+01 : f32
    %30 = vector.broadcast %cst_13 : f32 to vector<1x256xf32>
    %31 = arith.maximumf %30, %29 : vector<1x256xf32>
    %32 = vector.broadcast %cst_14 : f32 to vector<1x256xf32>
    %33 = arith.minimumf %32, %31 : vector<1x256xf32>
    %cst_15 = arith.constant 1.000000e+00 : f32
    %34 = vector.broadcast %cst_15 : f32 to vector<1x256xf32>
    %35 = arith.addf %21, %34 : vector<1x256xf32>
    %cst_16 = arith.constant 1.600000e+01 : f32
    %36 = vector.broadcast %cst_16 : f32 to vector<1x256xf32>
    %37 = arith.mulf %35, %36 : vector<1x256xf32>
    %cst_17 = arith.constant 1.000000e+00 : f32
    %38 = vector.broadcast %cst_17 : f32 to vector<1x256xf32>
    %39 = arith.subf %37, %38 : vector<1x256xf32>
    %cst_18 = arith.constant 5.000000e-01 : f32
    %40 = vector.broadcast %cst_18 : f32 to vector<1x256xf32>
    %41 = arith.mulf %39, %40 : vector<1x256xf32>
    %cst_19 = arith.constant 0.000000e+00 : f32
    %cst_20 = arith.constant 1.500000e+01 : f32
    %42 = vector.broadcast %cst_19 : f32 to vector<1x256xf32>
    %43 = arith.maximumf %42, %41 : vector<1x256xf32>
    %44 = vector.broadcast %cst_20 : f32 to vector<1x256xf32>
    %45 = arith.minimumf %44, %43 : vector<1x256xf32>
    %46 = math.floor %33 : vector<1x256xf32>
    %47 = math.floor %45 : vector<1x256xf32>
    %48 = arith.subf %33, %46 : vector<1x256xf32>
    %49 = arith.subf %45, %47 : vector<1x256xf32>
    %cst_21 = arith.constant 1.000000e+00 : f32
    %50 = vector.broadcast %cst_21 : f32 to vector<1x256xf32>
    %51 = arith.subf %50, %48 : vector<1x256xf32>
    %cst_22 = arith.constant 1.000000e+00 : f32
    %52 = vector.broadcast %cst_22 : f32 to vector<1x256xf32>
    %53 = arith.subf %52, %49 : vector<1x256xf32>
    %54 = arith.fptosi %46 : vector<1x256xf32> to vector<1x256xi32>
    %55 = arith.fptosi %47 : vector<1x256xf32> to vector<1x256xi32>
    %c1_i32 = arith.constant 1 : i32
    %56 = vector.broadcast %c1_i32 : i32 to vector<1x256xi32>
    %57 = arith.addi %54, %56 : vector<1x256xi32>
    %c15_i32 = arith.constant 15 : i32
    %58 = vector.broadcast %c15_i32 : i32 to vector<1x256xi32>
    %59 = arith.minsi %57, %58 : vector<1x256xi32>
    %c1_i32_23 = arith.constant 1 : i32
    %60 = vector.broadcast %c1_i32_23 : i32 to vector<1x256xi32>
    %61 = arith.addi %55, %60 : vector<1x256xi32>
    %c15_i32_24 = arith.constant 15 : i32
    %62 = vector.broadcast %c15_i32_24 : i32 to vector<1x256xi32>
    %63 = arith.minsi %61, %62 : vector<1x256xi32>
    %64 = tpu.iota {dimensions = array<i32: 0>} : vector<256x256xi32>
    %65 = arith.mulf %53, %51 : vector<1x256xf32>
    %c16_i32 = arith.constant 16 : i32
    %66 = vector.broadcast %c16_i32 : i32 to vector<1x256xi32>
    %67 = arith.muli %55, %66 : vector<1x256xi32>
    %68 = arith.addi %67, %54 : vector<1x256xi32>
    %69 = vector.broadcast %68 : vector<1x256xi32> to vector<256x256xi32>
    %70 = arith.cmpi eq, %64, %69 : vector<256x256xi32>
    %cst_25 = arith.constant 0.000000e+00 : f32
    %71 = vector.shape_cast %65 : vector<1x256xf32> to vector<1x256xf32>
    %72 = vector.broadcast %71 : vector<1x256xf32> to vector<256x256xf32>
    %73 = vector.broadcast %cst_25 : f32 to vector<256x256xf32>
    %74 = arith.select %70, %72, %73 : vector<256x256xi1>, vector<256x256xf32>
    %75 = arith.mulf %53, %48 : vector<1x256xf32>
    %c16_i32_26 = arith.constant 16 : i32
    %76 = vector.broadcast %c16_i32_26 : i32 to vector<1x256xi32>
    %77 = arith.muli %55, %76 : vector<1x256xi32>
    %78 = arith.addi %77, %59 : vector<1x256xi32>
    %79 = vector.broadcast %78 : vector<1x256xi32> to vector<256x256xi32>
    %80 = arith.cmpi eq, %64, %79 : vector<256x256xi32>
    %cst_27 = arith.constant 0.000000e+00 : f32
    %81 = vector.shape_cast %75 : vector<1x256xf32> to vector<1x256xf32>
    %82 = vector.broadcast %81 : vector<1x256xf32> to vector<256x256xf32>
    %83 = vector.broadcast %cst_27 : f32 to vector<256x256xf32>
    %84 = arith.select %80, %82, %83 : vector<256x256xi1>, vector<256x256xf32>
    %85 = arith.addf %74, %84 : vector<256x256xf32>
    %86 = arith.mulf %49, %51 : vector<1x256xf32>
    %c16_i32_28 = arith.constant 16 : i32
    %87 = vector.broadcast %c16_i32_28 : i32 to vector<1x256xi32>
    %88 = arith.muli %63, %87 : vector<1x256xi32>
    %89 = arith.addi %88, %54 : vector<1x256xi32>
    %90 = vector.broadcast %89 : vector<1x256xi32> to vector<256x256xi32>
    %91 = arith.cmpi eq, %64, %90 : vector<256x256xi32>
    %cst_29 = arith.constant 0.000000e+00 : f32
    %92 = vector.shape_cast %86 : vector<1x256xf32> to vector<1x256xf32>
    %93 = vector.broadcast %92 : vector<1x256xf32> to vector<256x256xf32>
    %94 = vector.broadcast %cst_29 : f32 to vector<256x256xf32>
    %95 = arith.select %91, %93, %94 : vector<256x256xi1>, vector<256x256xf32>
    %96 = arith.addf %85, %95 : vector<256x256xf32>
    %97 = arith.mulf %49, %48 : vector<1x256xf32>
    %c16_i32_30 = arith.constant 16 : i32
    %98 = vector.broadcast %c16_i32_30 : i32 to vector<1x256xi32>
    %99 = arith.muli %63, %98 : vector<1x256xi32>
    %100 = arith.addi %99, %59 : vector<1x256xi32>
    %101 = vector.broadcast %100 : vector<1x256xi32> to vector<256x256xi32>
    %102 = arith.cmpi eq, %64, %101 : vector<256x256xi32>
    %cst_31 = arith.constant 0.000000e+00 : f32
    %103 = vector.shape_cast %97 : vector<1x256xf32> to vector<1x256xf32>
    %104 = vector.broadcast %103 : vector<1x256xf32> to vector<256x256xf32>
    %105 = vector.broadcast %cst_31 : f32 to vector<256x256xf32>
    %106 = arith.select %102, %104, %105 : vector<256x256xi1>, vector<256x256xf32>
    %107 = arith.addf %96, %106 : vector<256x256xf32>
    %c0_32 = arith.constant 0 : index
    %c0_33 = arith.constant 0 : index
    %108 = vector.load %arg2[%c0_32, %c0_33] : memref<10x256xf32, #tpu.memory_space<vmem>>, vector<10x256xf32>
    %cst_34 = arith.constant dense<0.000000e+00> : vector<10x256xf32>
    %109 = tpu.matmul %108, %107, %cst_34 {dimension_numbers = #tpu.dot_dimension_numbers<[1], [0], [0], [1], [0, 0, 1, 1], [], []>} : vector<10x256xf32>, vector<256x256xf32>, vector<10x256xf32> -> vector<10x256xf32>
    %c0_35 = arith.constant 0 : index
    %c0_36 = arith.constant 0 : index
    %110 = vector.load %arg4[%c0_35, %c0_36] : memref<10x256xf32, #tpu.memory_space<vmem>>, vector<10x256xf32>
    tpu.vector_store %arg4[%c0_35, %c0_36], %109 {strides = array<i32>} : memref<10x256xf32, #tpu.memory_space<vmem>>, vector<10x256xf32>,
    return
  }
  func.func @transform_0(%arg0: i32) -> (i32, i32) {
    %c0_i32 = arith.constant 0 : i32
    %c0_i32_0 = arith.constant 0 : i32
    %c0_i32_1 = arith.constant 0 : i32
    return %c0_i32, %c0_i32_0 : i32, i32
  }
  func.func @transform_1(%arg0: i32) -> (i32, i32) {
    %c0_i32 = arith.constant 0 : i32
    %c0_i32_0 = arith.constant 0 : i32
    %c0_i32_1 = arith.constant 0 : i32
    return %c0_i32, %c0_i32_0 : i32, i32
  }
  func.func @transform_2(%arg0: i32) -> (i32, i32) {
    %c0_i32 = arith.constant 0 : i32
    %c0_i32_0 = arith.constant 0 : i32
    return %c0_i32, %arg0 : i32, i32
  }
  func.func @transform_3(%arg0: i32) -> (i32, i32) {
    %c0_i32 = arith.constant 0 : i32
    %c0_i32_0 = arith.constant 0 : i32
    return %c0_i32, %arg0 : i32, i32
  }
}

</mosaic_0001>

<bundles_post_ra>
// kernel: tpu_custom_call.1
= control target key start
LH: loop header
LB: loop body
LE: loop exit
PB: predicated region body
PF: predicated region fallthrough
CT: control target
= control target key end

     0   :  { %8 = vsyncpa [#allocation5], 0  ;;  %s2163_s0 = inlined_call_operand.hbm [shape: f32[1,6], index: 0, kind: input, shape index: {}]   ;;  %s2164_s1 = inlined_call_operand.hbm [shape: f32[10,256], index: 1, kind: input, shape index: {}]   ;;  %s2165_s2 = inlined_call_operand.hbm [shape: f32[2,256], index: 2, kind: input, shape index: {}]   ;;  %s2166_s3 = inlined_call_operand.hbm [shape: f32[10,256], index: 3, kind: output, shape index: {}]  }
   0x1   :  { %9 = vsyncpa [#allocation3], 0 }
   0x2   :  { %10 = vsyncpa [#allocation8], 0 }
   0x3   :  { %11 = vsyncpa [#allocation4], 0  ;;  %s17_s14 = sshll.u32 %s2163_s0, 4  ;;  %s25_s17 = sshll.u32 %s2164_s1, 4  ;;  %s18_s14 = int_to_ptr.hbm [resolvable:$true] %s17_s14  ;;  %s26_s17 = int_to_ptr.hbm [resolvable:$true] %s25_s17 }
   0x4   :  { %s1112_s18 = smov [#allocation2]   ;;  %s1113_s19 = smov [#allocation6]  }
   0x5   :  { %20 = dma.hbm_to_smem %s18_s14, 16, %s1112_s18, [#allocation5]  }
   0x6   :  { %s27_s20 = sshll.u32 %s1113_s19, 4  ;;  %s1114_s21 = smov 256   ;;  %s28_s20 = int_to_ptr.vmem [resolvable:$true] %s27_s20 }
   0x7   :  { %s1115_s22 = smov 16   ;;  %s39_s0 = sshll.u32 %s2165_s2, 4  ;;  %s40_s0 = int_to_ptr.hbm [resolvable:$true] %s39_s0 }
   0x8   :  { %33 = dma.hbm_to_vmem [thread:$0]  %s26_s17, 512, %s28_s20, [#allocation3], %s1114_s21, %s1114_s21, %s1115_s22  }
   0x9   :  { %s1116_s25 = smov [#allocation7]  }
   0xa   :  { %s41_s26 = sshll.u32 %s1116_s25, 4  ;;  %s42_s26 = int_to_ptr.vmem [resolvable:$true] %s41_s26 }
   0xb   :  { %44 = dma.hbm_to_vmem [thread:$0]  %s40_s0, 64, %s42_s26, [#allocation8]  }
   0xc   :  { %1104 = dma.done.wait [#allocation5], 16  }
   0xd   :  { %1105 = vsyncadd [#allocation5], 4294967280 }
   0xe   :  { %1106 = dma.done.wait [#allocation3], 512  }
   0xf   :  { %1107 = vsyncadd [#allocation3], 4294966784 }
  0x10   :  { %1108 = dma.done.wait [#allocation8], 64  }
  0x11   :  { %1109 = vsyncadd [#allocation8], 4294967232 }
  0x12   :  { %57 = sfence }
  0x13   :  { %s58_s1 = sld [smem:[#allocation2]]  ;;  %v64_v0 = vld [vmem:[#allocation7] ss:$2 sm:$0x3]  ;;  %v107_v24 = vlaneseq  ;;  %s1117_s2 = smov [#allocation9]  }
  0x14   :  { %s1003_s27 = sld [smem:[#allocation2 + $0x1]]  ;;  %v66_v1 = vld [vmem:[#allocation7 + $0x1] ss:$2 sm:$0x3]  ;;  %s986_s5 = sshll.u32 %s1117_s2, 4  ;;  %s987_s5 = int_to_ptr.vmem [resolvable:$true] %s986_s5 }
  0x15   :  { %s1004_s28 = sld [smem:[#allocation2 + $0x2]]  ;;  %v1150_v29 = vshrl.u32 %v107_v24, 7  ;;  %s988_s8 = sshll.u32 %s2166_s3, 4  ;;  %s989_s8 = int_to_ptr.hbm [resolvable:$true] %s988_s8 }
  0x16   :  { %s1005_s29 = sld [smem:[#allocation2 + $0x3]] }
  0x17   :  { %s1006_s30 = sld [smem:[#allocation2 + $0x4]]  ;;  %v1153_v35 = vadd.s32 120, %v1150_v29  ;;  %v1156_v36 = vadd.s32 248, %v1150_v29  ;;  %v1159_v40 = vadd.s32 112, %v1150_v29  ;;  %v1162_v41 = vadd.s32 240, %v1150_v29 }
  0x18   :  { %s1007_s4 = sld [smem:[#allocation2 + $0x5]]  ;;  %v1165_v42 = vadd.s32 104, %v1150_v29  ;;  %v1168_v43 = vadd.s32 232, %v1150_v29  ;;  %v1175_v50 = vadd.s32 96, %v1150_v29  ;;  %v1178_v51 = vadd.s32 224, %v1150_v29 }
  0x19   :  { %v67_v2 = vstv %s58_s1 }
  0x1a   :  { %v68_v3 = vmul.f32 %v67_v2, %v64_v0  ;;  %v69_v4 = vstv %s1003_s27 }
  0x1b   :  { %v70_v5 = vmul.f32 %v69_v4, %v66_v1  ;;  %v72_v6 = vstv %s1004_s28 }
  0x1c   :  { %v74_v7 = vstv %s1005_s29 }
  0x1d   :  { %v71_v8 = vadd.f32 %v70_v5, %v68_v3  ;;  %v75_v9 = vmul.f32 %v74_v7, %v64_v0  ;;  %v76_v10 = vstv %s1006_s30 }
  0x1e   :  { %v77_v11 = vmul.f32 %v76_v10, %v66_v1  ;;  %v79_v13 = vstv %s1007_s4 }
  0x1f   :  { %v73_v12 = vadd.f32 %v72_v6, %v71_v8 }
  0x20   :  { %v78_v14 = vadd.f32 %v77_v11, %v75_v9 }
  0x21   :  { %v81_v15 = vadd.f32 1.0, %v73_v12 }
  0x22   :  { %v80_v16 = vadd.f32 %v79_v13, %v78_v14 }
  0x23   :  { %v82_v17 = vmul.f32 16.0, %v81_v15 }
  0x24   :  { %v87_v18 = vadd.f32 1.0, %v80_v16 }
  0x25   :  { %v1008_v19 = vadd.f32 -1.0, %v82_v17 }
  0x26   :  { %v88_v20 = vmul.f32 16.0, %v87_v18 }
  0x27   :  { %v84_v21 = vmul.f32 0.5, %v1008_v19 }
  0x28   :  { %v1009_v22 = vadd.f32 -1.0, %v88_v20 }
  0x29   :  { %v85_v23 = vmax.f32 %v84_v21, 0.0 }
  0x2a   :  { %v90_v25 = vmul.f32 0.5, %v1009_v22 }
  0x2b   :  { %v86_v26 = vmin.f32 %v85_v23, 15.0 }
  0x2c   :  { %v91_v27 = vmax.f32 %v90_v25, 0.0 }
  0x2d   :  { %v93_v28 = vfloor.f32 %v86_v26 }
  0x2e   :  { %v92_v30 = vmin.f32 %v91_v27, 15.0 }
  0x2f   :  { %v95_v31 = vsub.f32 %v86_v26, %v93_v28  ;;  %v1011_v32 = vcvt.f32.s32 %v93_v28 }
  0x30   :  { %v94_v33 = vfloor.f32 %v92_v30 }
  0x31   :  { %v101_v34 = vadd.s32 1, %v1011_v32  ;;  %v97_v38 = vsub.f32 1.0, %v95_v31 }
  0x32   :  { %v96_v37 = vsub.f32 %v92_v30, %v94_v33  ;;  %v1013_v39 = vcvt.f32.s32 %v94_v33 }
  0x33   :  { %vm102_vm0 = vcmp.lt.s32.totalorder %v101_v34, 15 }
  0x34   :  { %v98_v44 = vsub.f32 1.0, %v96_v37  ;;  %v103_v45 = vsel %vm102_vm0, %v101_v34, 15  ;;  %v104_v46 = vadd.s32 1, %v1013_v39  ;;  %v141_v47 = vmul.u32 16, %v1013_v39 }
  0x35   :  { %v1170_v48 = vmul.f32 %v97_v38, %v96_v37  ;;  %v1172_v49 = vmul.f32 %v96_v37, %v95_v31 }
  0x36   :  { %vm105_vm1 = vcmp.lt.s32.totalorder %v104_v46, 15  ;;  %v140_v52 = vmul.f32 %v98_v44, %v97_v38  ;;  %v142_v53 = vadd.s32 %v1011_v32, %v141_v47  ;;  %v1180_v54 = vmul.f32 %v98_v44, %v95_v31 }
  0x37   :  { %v106_v55 = vsel %vm105_vm1, %v104_v46, 15  ;;  %v279_v56 = vadd.s32 %v141_v47, %v103_v45  ;;  %v1183_v57 = vperm.slane %v1170_v48, 1  ;;  %v1186_v58 = vperm.slane %v1172_v49, 1 }
  0x38   :  { %v1188_v59 = vperm.slane %v142_v53, 1  ;;  %v1190_v60 = vperm.slane %v140_v52, 1  ;;  %v1193_v61 = vperm.slane %v1180_v54, 1  ;;  %v480_v62 = vmul.u32 16, %v106_v55 }
  0x39   :  { %v1195_v63 = vperm.slane %v279_v56, 1  ;;  %v1197_v0 = vperm.slane %v142_v53, 0  ;;  %v1199_v1 = vperm.slane %v140_v52, 0  ;;  %v1201_v2 = vperm.slane %v279_v56, 0 }
  0x3a   :  { %vm176_vm2 = vcmp.eq.s32.totalorder %v1153_v35, %v1188_v59  ;;  %v1205_v3 = vadd.s32 %v1011_v32, %v480_v62  ;;  %v1207_v4 = vadd.s32 %v480_v62, %v103_v45  ;;  %vm208_vm3 = vcmp.eq.s32.totalorder %v1156_v36, %v1188_v59 }
  0x3b   :  { %v245_v5 = vsel %vm176_vm2, %v1190_v60, 0.0  ;;  %vm313_vm4 = vcmp.eq.s32.totalorder %v1153_v35, %v1195_v63  ;;  %v277_v6 = vsel %vm208_vm3, %v1190_v60, 0.0  ;;  %vm345_vm5 = vcmp.eq.s32.totalorder %v1156_v36, %v1195_v63 }
  0x3c   :  { %v382_v7 = vsel %vm313_vm4, %v1193_v61, 0.0  ;;  %v1219_v8 = vperm.slane %v1205_v3, 1  ;;  %v1222_v9 = vperm.slane %v1207_v4, 1  ;;  %v414_v10 = vsel %vm345_vm5, %v1193_v61, 0.0 }
  0x3d   :  { %v446_v11 = vadd.f32 %v382_v7, %v245_v5  ;;  %v478_v12 = vadd.f32 %v414_v10, %v277_v6  ;;  %vm174_vm6 = vcmp.eq.s32.totalorder %v1159_v40, %v1188_v59  ;;  %vm311_vm7 = vcmp.eq.s32.totalorder %v1159_v40, %v1195_v63 }
  0x3e   :  { %vm515_vm8 = vcmp.eq.s32.totalorder %v1153_v35, %v1219_v8  ;;  %vm716_vm9 = vcmp.eq.s32.totalorder %v1153_v35, %v1222_v9  ;;  %vm547_vm10 = vcmp.eq.s32.totalorder %v1156_v36, %v1219_v8  ;;  %vm748_vm11 = vcmp.eq.s32.totalorder %v1156_v36, %v1222_v9 }
  0x3f   :  { %v584_v13 = vsel %vm515_vm8, %v1183_v57, 0.0  ;;  %v785_v14 = vsel %vm716_vm9, %v1186_v58, 0.0  ;;  %v616_v15 = vsel %vm547_vm10, %v1183_v57, 0.0  ;;  %v817_v16 = vsel %vm748_vm11, %v1186_v58, 0.0 }
  0x40   :  { %v648_v17 = vadd.f32 %v584_v13, %v446_v11  ;;  %v680_v18 = vadd.f32 %v616_v15, %v478_v12  ;;  %v243_v19 = vsel %vm174_vm6, %v1190_v60, 0.0  ;;  %v380_v20 = vsel %vm311_vm7, %v1193_v61, 0.0 }
  0x41   :  { %v444_v21 = vadd.f32 %v380_v20, %v243_v19  ;;  %vm513_vm12 = vcmp.eq.s32.totalorder %v1159_v40, %v1219_v8  ;;  %vm714_vm13 = vcmp.eq.s32.totalorder %v1159_v40, %v1222_v9  ;;  %vm206_vm14 = vcmp.eq.s32.totalorder %v1162_v41, %v1188_v59 }
  0x42   :  { %v849_v22 = vadd.f32 %v785_v14, %v648_v17  ;;  %v881_v23 = vadd.f32 %v817_v16, %v680_v18  ;;  %v582_v24 = vsel %vm513_vm12, %v1183_v57, 0.0  ;;  %v783_v25 = vsel %vm714_vm13, %v1186_v58, 0.0 }
  0x43   :  { %v646_v26 = vadd.f32 %v582_v24, %v444_v21  ;;  %v275_v27 = vsel %vm206_vm14, %v1190_v60, 0.0  ;;  %vm343_vm15 = vcmp.eq.s32.totalorder %v1162_v41, %v1195_v63  ;;  %vm545_vm0 = vcmp.eq.s32.totalorder %v1162_v41, %v1219_v8 }
  0x44   :  { %932 = vmatpush.msra.mxu2 %v849_v22  ;;  %955 = vmatpush.msra.mxu3 %v881_v23  ;;  %v412_v28 = vsel %vm343_vm15, %v1193_v61, 0.0  ;;  %v614_v30 = vsel %vm545_vm0, %v1183_v57, 0.0  ;;  %vm746_vm1 = vcmp.eq.s32.totalorder %v1162_v41, %v1222_v9  ;;  %vm172_vm2 = vcmp.eq.s32.totalorder %v1165_v42, %v1188_v59 }
  0x45   :  { %v847_v31 = vadd.f32 %v783_v25, %v646_v26  ;;  %v476_v32 = vadd.f32 %v412_v28, %v275_v27  ;;  %v815_v33 = vsel %vm746_vm1, %v1186_v58, 0.0  ;;  %v241_v34 = vsel %vm172_vm2, %v1190_v60, 0.0 }
  0x46   :  { %vm309_vm3 = vcmp.eq.s32.totalorder %v1165_v42, %v1195_v63  ;;  %vm511_vm4 = vcmp.eq.s32.totalorder %v1165_v42, %v1219_v8  ;;  %vm712_vm5 = vcmp.eq.s32.totalorder %v1165_v42, %v1222_v9  ;;  %vm204_vm6 = vcmp.eq.s32.totalorder %v1168_v43, %v1188_v59 }
  0x47   :  { %933 = vmatpush.msra.mxu2 %v847_v31  ;;  %v678_v37 = vadd.f32 %v614_v30, %v476_v32  ;;  %v378_v38 = vsel %vm309_vm3, %v1193_v61, 0.0  ;;  %v580_v39 = vsel %vm511_vm4, %v1183_v57, 0.0  ;;  %v781_v44 = vsel %vm712_vm5, %v1186_v58, 0.0 }
  0x48   :  { %v442_v45 = vadd.f32 %v378_v38, %v241_v34  ;;  %v273_v46 = vsel %vm204_vm6, %v1190_v60, 0.0  ;;  %vm341_vm7 = vcmp.eq.s32.totalorder %v1168_v43, %v1195_v63  ;;  %vm543_vm8 = vcmp.eq.s32.totalorder %v1168_v43, %v1219_v8 }
  0x49   :  { %v879_v47 = vadd.f32 %v815_v33, %v678_v37  ;;  %v410_v52 = vsel %vm341_vm7, %v1193_v61, 0.0  ;;  %v612_v53 = vsel %vm543_vm8, %v1183_v57, 0.0  ;;  %vm744_vm9 = vcmp.eq.s32.totalorder %v1168_v43, %v1222_v9 }
  0x4a   :  { %v644_v55 = vadd.f32 %v580_v39, %v442_v45  ;;  %v474_v56 = vadd.f32 %v410_v52, %v273_v46  ;;  %v813_v62 = vsel %vm744_vm9, %v1186_v58, 0.0  ;;  %vm175_vm10 = vcmp.eq.s32.totalorder %v1153_v35, %v1197_v0 }
  0x4b   :  { %956 = vmatpush.msra.mxu3 %v879_v47  ;;  %v244_v5 = vsel %vm175_vm10, %v1199_v1, 0.0  ;;  %vm312_vm11 = vcmp.eq.s32.totalorder %v1153_v35, %v1201_v2  ;;  %v1291_v6 = vperm.slane %v1180_v54, 0  ;;  %v1294_v7 = vperm.slane %v1205_v3, 0 }
  0x4c   :  { %v845_v10 = vadd.f32 %v781_v44, %v644_v55  ;;  %v676_v11 = vadd.f32 %v612_v53, %v474_v56  ;;  %v1297_v12 = vperm.slane %v1170_v48, 0  ;;  %v1300_v13 = vperm.slane %v1207_v4, 0 }
  0x4d   :  { %v381_v14 = vsel %vm312_vm11, %v1291_v6, 0.0  ;;  %vm514_vm12 = vcmp.eq.s32.totalorder %v1153_v35, %v1294_v7  ;;  %v1306_v15 = vperm.slane %v1172_v49, 0  ;;  %vm207_vm13 = vcmp.eq.s32.totalorder %v1156_v36, %v1197_v0 }
  0x4e   :  { %934 = vmatpush.msra.mxu2 %v845_v10  ;;  %v877_v54 = vadd.f32 %v813_v62, %v676_v11  ;;  %v445_v3 = vadd.f32 %v381_v14, %v244_v5  ;;  %v583_v48 = vsel %vm514_vm12, %v1297_v12, 0.0  ;;  %vm715_vm14 = vcmp.eq.s32.totalorder %v1153_v35, %v1300_v13 }
  0x4f   :  { %v784_v4 = vsel %vm715_vm14, %v1306_v15, 0.0  ;;  %v276_v16 = vsel %vm207_vm13, %v1199_v1, 0.0  ;;  %vm344_vm15 = vcmp.eq.s32.totalorder %v1156_v36, %v1201_v2  ;;  %vm546_vm0 = vcmp.eq.s32.totalorder %v1156_v36, %v1294_v7 }
  0x50   :  { %957 = vmatpush.msra.mxu3 %v877_v54  ;;  %v647_v49 = vadd.f32 %v583_v48, %v445_v3  ;;  %v413_v17 = vsel %vm344_vm15, %v1291_v6, 0.0  ;;  %v615_v18 = vsel %vm546_vm0, %v1297_v12, 0.0  ;;  %vm747_vm1 = vcmp.eq.s32.totalorder %v1156_v36, %v1300_v13 }
  0x51   :  { %v477_v35 = vadd.f32 %v413_v17, %v276_v16  ;;  %v816_v19 = vsel %vm747_vm1, %v1306_v15, 0.0  ;;  %vm170_vm2 = vcmp.eq.s32.totalorder %v1175_v50, %v1188_v59  ;;  %vm307_vm3 = vcmp.eq.s32.totalorder %v1175_v50, %v1195_v63 }
  0x52   :  { %v848_v20 = vadd.f32 %v784_v4, %v647_v49  ;;  %v239_v21 = vsel %vm170_vm2, %v1190_v60, 0.0  ;;  %v376_v22 = vsel %vm307_vm3, %v1193_v61, 0.0  ;;  %vm509_vm4 = vcmp.eq.s32.totalorder %v1175_v50, %v1219_v8 }
  0x53   :  { %v679_v23 = vadd.f32 %v615_v18, %v477_v35  ;;  %v440_v24 = vadd.f32 %v376_v22, %v239_v21  ;;  %v578_v36 = vsel %vm509_vm4, %v1183_v57, 0.0  ;;  %vm710_vm5 = vcmp.eq.s32.totalorder %v1175_v50, %v1222_v9 }
  0x54   :  { %886 = vmatpush.msra.mxu0 %v848_v20  ;;  %v779_v25 = vsel %vm710_vm5, %v1186_v58, 0.0  ;;  %vm202_vm6 = vcmp.eq.s32.totalorder %v1178_v51, %v1188_v59  ;;  %vm339_vm7 = vcmp.eq.s32.totalorder %v1178_v51, %v1195_v63  ;;  %vm541_vm8 = vcmp.eq.s32.totalorder %v1178_v51, %v1219_v8 }
  0x55   :  { %v880_v26 = vadd.f32 %v816_v19, %v679_v23  ;;  %v642_v27 = vadd.f32 %v578_v36, %v440_v24  ;;  %v271_v28 = vsel %vm202_vm6, %v1190_v60, 0.0  ;;  %v408_v30 = vsel %vm339_vm7, %v1193_v61, 0.0 }
  0x56   :  { %v472_v31 = vadd.f32 %v408_v30, %v271_v28  ;;  %v610_v32 = vsel %vm541_vm8, %v1183_v57, 0.0  ;;  %vm742_vm9 = vcmp.eq.s32.totalorder %v1178_v51, %v1222_v9  ;;  %vm173_vm10 = vcmp.eq.s32.totalorder %v1159_v40, %v1197_v0 }
  0x57   :  { %909 = vmatpush.msra.mxu1 %v880_v26  ;;  %v843_v33 = vadd.f32 %v779_v25, %v642_v27  ;;  %v811_v34 = vsel %vm742_vm9, %v1186_v58, 0.0  ;;  %v242_v37 = vsel %vm173_vm10, %v1199_v1, 0.0  ;;  %vm310_vm11 = vcmp.eq.s32.totalorder %v1159_v40, %v1201_v2 }
  0x58   :  { %v674_v38 = vadd.f32 %v610_v32, %v472_v31  ;;  %v379_v39 = vsel %vm310_vm11, %v1291_v6, 0.0  ;;  %vm512_vm12 = vcmp.eq.s32.totalorder %v1159_v40, %v1294_v7  ;;  %vm713_vm13 = vcmp.eq.s32.totalorder %v1159_v40, %v1300_v13 }
  0x59   :  { %935 = vmatpush.msra.mxu2 %v843_v33  ;;  %v443_v44 = vadd.f32 %v379_v39, %v242_v37  ;;  %v581_v45 = vsel %vm512_vm12, %v1297_v12, 0.0  ;;  %v782_v46 = vsel %vm713_vm13, %v1306_v15, 0.0  ;;  %vm205_vm14 = vcmp.eq.s32.totalorder %v1162_v41, %v1197_v0 }
  0x5a   :  { %v875_v47 = vadd.f32 %v811_v34, %v674_v38  ;;  %v274_v52 = vsel %vm205_vm14, %v1199_v1, 0.0  ;;  %vm342_vm15 = vcmp.eq.s32.totalorder %v1162_v41, %v1201_v2  ;;  %vm544_vm0 = vcmp.eq.s32.totalorder %v1162_v41, %v1294_v7 }
  0x5b   :  { %v645_v53 = vadd.f32 %v581_v45, %v443_v44  ;;  %v411_v40 = vsel %vm342_vm15, %v1291_v6, 0.0  ;;  %v613_v55 = vsel %vm544_vm0, %v1297_v12, 0.0  ;;  %vm745_vm1 = vcmp.eq.s32.totalorder %v1162_v41, %v1300_v13 }
  0x5c   :  { %958 = vmatpush.msra.mxu3 %v875_v47  ;;  %v475_v56 = vadd.f32 %v411_v40, %v274_v52  ;;  %v814_v62 = vsel %vm745_vm1, %v1306_v15, 0.0  ;;  %v1373_v5 = vadd.s32 88, %v1150_v29  ;;  %v1376_v10 = vadd.s32 216, %v1150_v29 }
  0x5d   :  { %v846_v11 = vadd.f32 %v782_v46, %v645_v53  ;;  %vm171_vm2 = vcmp.eq.s32.totalorder %v1165_v42, %v1197_v0  ;;  %vm308_vm3 = vcmp.eq.s32.totalorder %v1165_v42, %v1201_v2  ;;  %vm510_vm4 = vcmp.eq.s32.totalorder %v1165_v42, %v1294_v7 }
  0x5e   :  { %v677_v41 = vadd.f32 %v613_v55, %v475_v56  ;;  %vm168_vm5 = vcmp.eq.s32.totalorder %v1373_v5, %v1188_v59  ;;  %vm305_vm6 = vcmp.eq.s32.totalorder %v1373_v5, %v1195_v63  ;;  %vm507_vm7 = vcmp.eq.s32.totalorder %v1373_v5, %v1219_v8 }
  0x5f   :  { %887 = vmatpush.msra.mxu0 %v846_v11  ;;  %v237_v14 = vsel %vm168_vm5, %v1190_v60, 0.0  ;;  %v374_v54 = vsel %vm305_vm6, %v1193_v61, 0.0  ;;  %v576_v3 = vsel %vm507_vm7, %v1183_v57, 0.0  ;;  %vm708_vm8 = vcmp.eq.s32.totalorder %v1373_v5, %v1222_v9 }
  0x60   :  { %v878_v48 = vadd.f32 %v814_v62, %v677_v41  ;;  %v438_v4 = vadd.f32 %v374_v54, %v237_v14  ;;  %v777_v16 = vsel %vm708_vm8, %v1186_v58, 0.0  ;;  %vm200_vm9 = vcmp.eq.s32.totalorder %v1376_v10, %v1188_v59 }
  0x61   :  { %v269_v49 = vsel %vm200_vm9, %v1190_v60, 0.0  ;;  %vm337_vm10 = vcmp.eq.s32.totalorder %v1376_v10, %v1195_v63  ;;  %vm539_vm11 = vcmp.eq.s32.totalorder %v1376_v10, %v1219_v8  ;;  %vm740_vm12 = vcmp.eq.s32.totalorder %v1376_v10, %v1222_v9 }
  0x62   :  { %910 = vmatpush.msra.mxu1 %v878_v48  ;;  %v640_v17 = vadd.f32 %v576_v3, %v438_v4  ;;  %v406_v18 = vsel %vm337_vm10, %v1193_v61, 0.0  ;;  %v608_v35 = vsel %vm539_vm11, %v1183_v57, 0.0  ;;  %v809_v19 = vsel %vm740_vm12, %v1186_v58, 0.0 }
  0x63   :  { %v470_v20 = vadd.f32 %v406_v18, %v269_v49  ;;  %v240_v21 = vsel %vm171_vm2, %v1199_v1, 0.0  ;;  %v377_v22 = vsel %vm308_vm3, %v1291_v6, 0.0  ;;  %v579_v23 = vsel %vm510_vm4, %v1297_v12, 0.0 }
  0x64   :  { %v841_v24 = vadd.f32 %v777_v16, %v640_v17  ;;  %v441_v36 = vadd.f32 %v377_v22, %v240_v21  ;;  %vm711_vm13 = vcmp.eq.s32.totalorder %v1165_v42, %v1300_v13  ;;  %vm203_vm14 = vcmp.eq.s32.totalorder %v1168_v43, %v1197_v0 }
  0x65   :  { %v672_v25 = vadd.f32 %v608_v35, %v470_v20  ;;  %v780_v26 = vsel %vm711_vm13, %v1306_v15, 0.0  ;;  %v272_v27 = vsel %vm203_vm14, %v1199_v1, 0.0  ;;  %vm340_vm15 = vcmp.eq.s32.totalorder %v1168_v43, %v1201_v2 }
  0x66   :  { %936 = vmatpush.msra.mxu2 %v841_v24  ;;  %v643_v28 = vadd.f32 %v579_v23, %v441_v36  ;;  %v409_v30 = vsel %vm340_vm15, %v1291_v6, 0.0  ;;  %vm542_vm0 = vcmp.eq.s32.totalorder %v1168_v43, %v1294_v7  ;;  %vm743_vm1 = vcmp.eq.s32.totalorder %v1168_v43, %v1300_v13 }
  0x67   :  { %v873_v42 = vadd.f32 %v809_v19, %v672_v25  ;;  %v473_v31 = vadd.f32 %v409_v30, %v272_v27  ;;  %v611_v32 = vsel %vm542_vm0, %v1297_v12, 0.0  ;;  %v812_v33 = vsel %vm743_vm1, %v1306_v15, 0.0 }
  0x68   :  { %v844_v34 = vadd.f32 %v780_v26, %v643_v28  ;;  %v1436_v37 = vadd.s32 80, %v1150_v29  ;;  %v1439_v38 = vadd.s32 208, %v1150_v29  ;;  %vm169_vm2 = vcmp.eq.s32.totalorder %v1175_v50, %v1197_v0 }
  0x69   :  { %959 = vmatpush.msra.mxu3 %v873_v42  ;;  %v675_v39 = vadd.f32 %v611_v32, %v473_v31  ;;  %v238_v43 = vsel %vm169_vm2, %v1199_v1, 0.0  ;;  %vm306_vm3 = vcmp.eq.s32.totalorder %v1175_v50, %v1201_v2  ;;  %vm508_vm4 = vcmp.eq.s32.totalorder %v1175_v50, %v1294_v7 }
  0x6a   :  { %888 = vmatpush.msra.mxu0 %v844_v34  ;;  %vm166_vm5 = vcmp.eq.s32.totalorder %v1436_v37, %v1188_v59  ;;  %vm303_vm6 = vcmp.eq.s32.totalorder %v1436_v37, %v1195_v63  ;;  %vm505_vm7 = vcmp.eq.s32.totalorder %v1436_v37, %v1219_v8  ;;  %vm706_vm8 = vcmp.eq.s32.totalorder %v1436_v37, %v1222_v9 }
  0x6b   :  { %v876_v44 = vadd.f32 %v812_v33, %v675_v39  ;;  %v235_v45 = vsel %vm166_vm5, %v1190_v60, 0.0  ;;  %v372_v46 = vsel %vm303_vm6, %v1193_v61, 0.0  ;;  %v574_v47 = vsel %vm505_vm7, %v1183_v57, 0.0 }
  0x6c   :  { %v436_v52 = vadd.f32 %v372_v46, %v235_v45  ;;  %v775_v53 = vsel %vm706_vm8, %v1186_v58, 0.0  ;;  %vm198_vm9 = vcmp.eq.s32.totalorder %v1439_v38, %v1188_v59  ;;  %vm335_vm10 = vcmp.eq.s32.totalorder %v1439_v38, %v1195_v63 }
  0x6d   :  { %911 = vmatpush.msra.mxu1 %v876_v44  ;;  %v267_v40 = vsel %vm198_vm9, %v1190_v60, 0.0  ;;  %v404_v55 = vsel %vm335_vm10, %v1193_v61, 0.0  ;;  %vm537_vm11 = vcmp.eq.s32.totalorder %v1439_v38, %v1219_v8  ;;  %vm738_vm12 = vcmp.eq.s32.totalorder %v1439_v38, %v1222_v9 }
  0x6e   :  { %v638_v56 = vadd.f32 %v574_v47, %v436_v52  ;;  %v468_v62 = vadd.f32 %v404_v55, %v267_v40  ;;  %v606_v11 = vsel %vm537_vm11, %v1183_v57, 0.0  ;;  %v807_v41 = vsel %vm738_vm12, %v1186_v58, 0.0 }
  0x6f   :  { %v375_v14 = vsel %vm306_vm3, %v1291_v6, 0.0  ;;  %v577_v54 = vsel %vm508_vm4, %v1297_v12, 0.0  ;;  %vm709_vm13 = vcmp.eq.s32.totalorder %v1175_v50, %v1300_v13  ;;  %vm201_vm14 = vcmp.eq.s32.totalorder %v1178_v51, %v1197_v0 }
  0x70   :  { %v839_v3 = vadd.f32 %v775_v53, %v638_v56  ;;  %v670_v48 = vadd.f32 %v606_v11, %v468_v62  ;;  %v439_v4 = vadd.f32 %v375_v14, %v238_v43  ;;  %v778_v16 = vsel %vm709_vm13, %v1306_v15, 0.0 }
  0x71   :  { %v270_v49 = vsel %vm201_vm14, %v1199_v1, 0.0  ;;  %vm338_vm15 = vcmp.eq.s32.totalorder %v1178_v51, %v1201_v2  ;;  %vm540_vm0 = vcmp.eq.s32.totalorder %v1178_v51, %v1294_v7  ;;  %vm741_vm1 = vcmp.eq.s32.totalorder %v1178_v51, %v1300_v13 }
  0x72   :  { %937 = vmatpush.msra.mxu2 %v839_v3  ;;  %v871_v50 = vadd.f32 %v807_v41, %v670_v48  ;;  %v641_v17 = vadd.f32 %v577_v54, %v439_v4  ;;  %v407_v18 = vsel %vm338_vm15, %v1291_v6, 0.0  ;;  %v609_v35 = vsel %vm540_vm0, %v1297_v12, 0.0 }
  0x73   :  { %v471_v19 = vadd.f32 %v407_v18, %v270_v49  ;;  %v810_v20 = vsel %vm741_vm1, %v1306_v15, 0.0  ;;  %v1496_v21 = vadd.s32 72, %v1150_v29  ;;  %v1499_v22 = vadd.s32 200, %v1150_v29 }
  0x74   :  { %960 = vmatpush.msra.mxu3 %v871_v50  ;;  %v842_v23 = vadd.f32 %v778_v16, %v641_v17  ;;  %vm167_vm2 = vcmp.eq.s32.totalorder %v1373_v5, %v1197_v0  ;;  %vm304_vm3 = vcmp.eq.s32.totalorder %v1373_v5, %v1201_v2  ;;  %vm506_vm4 = vcmp.eq.s32.totalorder %v1373_v5, %v1294_v7 }
  0x75   :  { %v673_v51 = vadd.f32 %v609_v35, %v471_v19  ;;  %vm164_vm5 = vcmp.eq.s32.totalorder %v1496_v21, %v1188_v59  ;;  %vm301_vm6 = vcmp.eq.s32.totalorder %v1496_v21, %v1195_v63  ;;  %vm503_vm7 = vcmp.eq.s32.totalorder %v1496_v21, %v1219_v8 }
  0x76   :  { %889 = vmatpush.msra.mxu0 %v842_v23  ;;  %v233_v24 = vsel %vm164_vm5, %v1190_v60, 0.0  ;;  %v370_v36 = vsel %vm301_vm6, %v1193_v61, 0.0  ;;  %v572_v25 = vsel %vm503_vm7, %v1183_v57, 0.0  ;;  %vm704_vm8 = vcmp.eq.s32.totalorder %v1496_v21, %v1222_v9 }
  0x77   :  { %v874_v26 = vadd.f32 %v810_v20, %v673_v51  ;;  %v434_v27 = vadd.f32 %v370_v36, %v233_v24  ;;  %v773_v28 = vsel %vm704_vm8, %v1186_v58, 0.0  ;;  %vm196_vm9 = vcmp.eq.s32.totalorder %v1499_v22, %v1188_v59 }
  0x78   :  { %v265_v30 = vsel %vm196_vm9, %v1190_v60, 0.0  ;;  %vm333_vm10 = vcmp.eq.s32.totalorder %v1499_v22, %v1195_v63  ;;  %vm535_vm11 = vcmp.eq.s32.totalorder %v1499_v22, %v1219_v8  ;;  %vm736_vm12 = vcmp.eq.s32.totalorder %v1499_v22, %v1222_v9 }
  0x79   :  { %912 = vmatpush.msra.mxu1 %v874_v26  ;;  %v636_v42 = vadd.f32 %v572_v25, %v434_v27  ;;  %v402_v31 = vsel %vm333_vm10, %v1193_v61, 0.0  ;;  %v604_v32 = vsel %vm535_vm11, %v1183_v57, 0.0  ;;  %v805_v33 = vsel %vm736_vm12, %v1186_v58, 0.0 }
  0x7a   :  { %v466_v34 = vadd.f32 %v402_v31, %v265_v30  ;;  %v236_v39 = vsel %vm167_vm2, %v1199_v1, 0.0  ;;  %v373_v43 = vsel %vm304_vm3, %v1291_v6, 0.0  ;;  %v575_v44 = vsel %vm506_vm4, %v1297_v12, 0.0 }
  0x7b   :  { %v837_v45 = vadd.f32 %v773_v28, %v636_v42  ;;  %v437_v46 = vadd.f32 %v373_v43, %v236_v39  ;;  %vm707_vm13 = vcmp.eq.s32.totalorder %v1373_v5, %v1300_v13  ;;  %vm199_vm14 = vcmp.eq.s32.totalorder %v1376_v10, %v1197_v0 }
  0x7c   :  { %v668_v47 = vadd.f32 %v604_v32, %v466_v34  ;;  %v776_v52 = vsel %vm707_vm13, %v1306_v15, 0.0  ;;  %v268_v53 = vsel %vm199_vm14, %v1199_v1, 0.0  ;;  %vm336_vm15 = vcmp.eq.s32.totalorder %v1376_v10, %v1201_v2 }
  0x7d   :  { %938 = vmatpush.msra.mxu2 %v837_v45  ;;  %v639_v40 = vadd.f32 %v575_v44, %v437_v46  ;;  %v405_v55 = vsel %vm336_vm15, %v1291_v6, 0.0  ;;  %vm538_vm0 = vcmp.eq.s32.totalorder %v1376_v10, %v1294_v7  ;;  %vm739_vm1 = vcmp.eq.s32.totalorder %v1376_v10, %v1300_v13 }
  0x7e   :  { %v869_v5 = vadd.f32 %v805_v33, %v668_v47  ;;  %v469_v56 = vadd.f32 %v405_v55, %v268_v53  ;;  %v607_v62 = vsel %vm538_vm0, %v1297_v12, 0.0  ;;  %v808_v11 = vsel %vm739_vm1, %v1306_v15, 0.0 }
  0x7f   :  { %v840_v41 = vadd.f32 %v776_v52, %v639_v40  ;;  %v1559_v14 = vadd.s32 64, %v1150_v29  ;;  %v1562_v54 = vadd.s32 192, %v1150_v29  ;;  %vm165_vm2 = vcmp.eq.s32.totalorder %v1436_v37, %v1197_v0 }
  0x80   :  { %961 = vmatpush.msra.mxu3 %v869_v5  ;;  %v671_v3 = vadd.f32 %v607_v62, %v469_v56  ;;  %v234_v10 = vsel %vm165_vm2, %v1199_v1, 0.0  ;;  %vm302_vm3 = vcmp.eq.s32.totalorder %v1436_v37, %v1201_v2  ;;  %vm504_vm4 = vcmp.eq.s32.totalorder %v1436_v37, %v1294_v7 }
  0x81   :  { %890 = vmatpush.msra.mxu0 %v840_v41  ;;  %vm162_vm5 = vcmp.eq.s32.totalorder %v1559_v14, %v1188_v59  ;;  %vm299_vm6 = vcmp.eq.s32.totalorder %v1559_v14, %v1195_v63  ;;  %vm501_vm7 = vcmp.eq.s32.totalorder %v1559_v14, %v1219_v8  ;;  %vm702_vm8 = vcmp.eq.s32.totalorder %v1559_v14, %v1222_v9 }
  0x82   :  { %v872_v48 = vadd.f32 %v808_v11, %v671_v3  ;;  %v231_v4 = vsel %vm162_vm5, %v1190_v60, 0.0  ;;  %v368_v16 = vsel %vm299_vm6, %v1193_v61, 0.0  ;;  %v570_v49 = vsel %vm501_vm7, %v1183_v57, 0.0 }
  0x83   :  { %v432_v50 = vadd.f32 %v368_v16, %v231_v4  ;;  %v771_v17 = vsel %vm702_vm8, %v1186_v58, 0.0  ;;  %vm194_vm9 = vcmp.eq.s32.totalorder %v1562_v54, %v1188_v59  ;;  %vm331_vm10 = vcmp.eq.s32.totalorder %v1562_v54, %v1195_v63 }
  0x84   :  { %913 = vmatpush.msra.mxu1 %v872_v48  ;;  %v263_v18 = vsel %vm194_vm9, %v1190_v60, 0.0  ;;  %v400_v35 = vsel %vm331_vm10, %v1193_v61, 0.0  ;;  %vm533_vm11 = vcmp.eq.s32.totalorder %v1562_v54, %v1219_v8  ;;  %vm734_vm12 = vcmp.eq.s32.totalorder %v1562_v54, %v1222_v9 }
  0x85   :  { %v634_v19 = vadd.f32 %v570_v49, %v432_v50  ;;  %v464_v20 = vadd.f32 %v400_v35, %v263_v18  ;;  %v602_v23 = vsel %vm533_vm11, %v1183_v57, 0.0  ;;  %v803_v51 = vsel %vm734_vm12, %v1186_v58, 0.0 }
  0x86   :  { %v371_v24 = vsel %vm302_vm3, %v1291_v6, 0.0  ;;  %v573_v36 = vsel %vm504_vm4, %v1297_v12, 0.0  ;;  %vm705_vm13 = vcmp.eq.s32.totalorder %v1436_v37, %v1300_v13  ;;  %vm197_vm14 = vcmp.eq.s32.totalorder %v1439_v38, %v1197_v0 }
  0x87   :  { %v835_v25 = vadd.f32 %v771_v17, %v634_v19  ;;  %v666_v26 = vadd.f32 %v602_v23, %v464_v20  ;;  %v435_v27 = vadd.f32 %v371_v24, %v234_v10  ;;  %v774_v28 = vsel %vm705_vm13, %v1306_v15, 0.0 }
  0x88   :  { %v266_v30 = vsel %vm197_vm14, %v1199_v1, 0.0  ;;  %vm334_vm15 = vcmp.eq.s32.totalorder %v1439_v38, %v1201_v2  ;;  %vm536_vm0 = vcmp.eq.s32.totalorder %v1439_v38, %v1294_v7  ;;  %vm737_vm1 = vcmp.eq.s32.totalorder %v1439_v38, %v1300_v13 }
  0x89   :  { %939 = vmatpush.msra.mxu2 %v835_v25  ;;  %v867_v37 = vadd.f32 %v803_v51, %v666_v26  ;;  %v637_v42 = vadd.f32 %v573_v36, %v435_v27  ;;  %v403_v31 = vsel %vm334_vm15, %v1291_v6, 0.0  ;;  %v605_v32 = vsel %vm536_vm0, %v1297_v12, 0.0 }
  0x8a   :  { %v467_v33 = vadd.f32 %v403_v31, %v266_v30  ;;  %v806_v34 = vsel %vm737_vm1, %v1306_v15, 0.0  ;;  %v1619_v39 = vadd.s32 56, %v1150_v29  ;;  %v1622_v43 = vadd.s32 184, %v1150_v29 }
  0x8b   :  { %962 = vmatpush.msra.mxu3 %v867_v37  ;;  %v838_v44 = vadd.f32 %v774_v28, %v637_v42  ;;  %vm163_vm2 = vcmp.eq.s32.totalorder %v1496_v21, %v1197_v0  ;;  %vm300_vm3 = vcmp.eq.s32.totalorder %v1496_v21, %v1201_v2  ;;  %vm502_vm4 = vcmp.eq.s32.totalorder %v1496_v21, %v1294_v7 }
  0x8c   :  { %v669_v38 = vadd.f32 %v605_v32, %v467_v33  ;;  %vm160_vm5 = vcmp.eq.s32.totalorder %v1619_v39, %v1188_v59  ;;  %vm297_vm6 = vcmp.eq.s32.totalorder %v1619_v39, %v1195_v63  ;;  %vm499_vm7 = vcmp.eq.s32.totalorder %v1619_v39, %v1219_v8 }
  0x8d   :  { %891 = vmatpush.msra.mxu0 %v838_v44  ;;  %v229_v45 = vsel %vm160_vm5, %v1190_v60, 0.0  ;;  %v366_v46 = vsel %vm297_vm6, %v1193_v61, 0.0  ;;  %v568_v47 = vsel %vm499_vm7, %v1183_v57, 0.0  ;;  %vm700_vm8 = vcmp.eq.s32.totalorder %v1619_v39, %v1222_v9 }
  0x8e   :  { %v870_v52 = vadd.f32 %v806_v34, %v669_v38  ;;  %v430_v53 = vadd.f32 %v366_v46, %v229_v45  ;;  %v769_v40 = vsel %vm700_vm8, %v1186_v58, 0.0  ;;  %vm192_vm9 = vcmp.eq.s32.totalorder %v1622_v43, %v1188_v59 }
  0x8f   :  { %v261_v55 = vsel %vm192_vm9, %v1190_v60, 0.0  ;;  %vm329_vm10 = vcmp.eq.s32.totalorder %v1622_v43, %v1195_v63  ;;  %vm531_vm11 = vcmp.eq.s32.totalorder %v1622_v43, %v1219_v8  ;;  %vm732_vm12 = vcmp.eq.s32.totalorder %v1622_v43, %v1222_v9 }
  0x90   :  { %914 = vmatpush.msra.mxu1 %v870_v52  ;;  %v632_v5 = vadd.f32 %v568_v47, %v430_v53  ;;  %v398_v56 = vsel %vm329_vm10, %v1193_v61, 0.0  ;;  %v600_v62 = vsel %vm531_vm11, %v1183_v57, 0.0  ;;  %v801_v11 = vsel %vm732_vm12, %v1186_v58, 0.0 }
  0x91   :  { %v462_v41 = vadd.f32 %v398_v56, %v261_v55  ;;  %v232_v3 = vsel %vm163_vm2, %v1199_v1, 0.0  ;;  %v369_v10 = vsel %vm300_vm3, %v1291_v6, 0.0  ;;  %v571_v48 = vsel %vm502_vm4, %v1297_v12, 0.0 }
  0x92   :  { %v833_v4 = vadd.f32 %v769_v40, %v632_v5  ;;  %v433_v16 = vadd.f32 %v369_v10, %v232_v3  ;;  %vm703_vm13 = vcmp.eq.s32.totalorder %v1496_v21, %v1300_v13  ;;  %vm195_vm14 = vcmp.eq.s32.totalorder %v1499_v22, %v1197_v0 }
  0x93   :  { %v664_v49 = vadd.f32 %v600_v62, %v462_v41  ;;  %v772_v50 = vsel %vm703_vm13, %v1306_v15, 0.0  ;;  %v264_v17 = vsel %vm195_vm14, %v1199_v1, 0.0  ;;  %vm332_vm15 = vcmp.eq.s32.totalorder %v1499_v22, %v1201_v2 }
  0x94   :  { %940 = vmatpush.msra.mxu2 %v833_v4  ;;  %v635_v18 = vadd.f32 %v571_v48, %v433_v16  ;;  %v401_v35 = vsel %vm332_vm15, %v1291_v6, 0.0  ;;  %vm534_vm0 = vcmp.eq.s32.totalorder %v1499_v22, %v1294_v7  ;;  %vm735_vm1 = vcmp.eq.s32.totalorder %v1499_v22, %v1300_v13 }
  0x95   :  { %v865_v21 = vadd.f32 %v801_v11, %v664_v49  ;;  %v465_v19 = vadd.f32 %v401_v35, %v264_v17  ;;  %v603_v20 = vsel %vm534_vm0, %v1297_v12, 0.0  ;;  %v804_v23 = vsel %vm735_vm1, %v1306_v15, 0.0 }
  0x96   :  { %v836_v51 = vadd.f32 %v772_v50, %v635_v18  ;;  %v1682_v24 = vadd.s32 48, %v1150_v29  ;;  %v1685_v36 = vadd.s32 176, %v1150_v29  ;;  %vm161_vm2 = vcmp.eq.s32.totalorder %v1559_v14, %v1197_v0 }
  0x97   :  { %963 = vmatpush.msra.mxu3 %v865_v21  ;;  %v667_v25 = vadd.f32 %v603_v20, %v465_v19  ;;  %v230_v22 = vsel %vm161_vm2, %v1199_v1, 0.0  ;;  %vm298_vm3 = vcmp.eq.s32.totalorder %v1559_v14, %v1201_v2  ;;  %vm500_vm4 = vcmp.eq.s32.totalorder %v1559_v14, %v1294_v7 }
  0x98   :  { %892 = vmatpush.msra.mxu0 %v836_v51  ;;  %vm158_vm5 = vcmp.eq.s32.totalorder %v1682_v24, %v1188_v59  ;;  %vm295_vm6 = vcmp.eq.s32.totalorder %v1682_v24, %v1195_v63  ;;  %vm497_vm7 = vcmp.eq.s32.totalorder %v1682_v24, %v1219_v8  ;;  %vm698_vm8 = vcmp.eq.s32.totalorder %v1682_v24, %v1222_v9 }
  0x99   :  { %v868_v26 = vadd.f32 %v804_v23, %v667_v25  ;;  %v227_v27 = vsel %vm158_vm5, %v1190_v60, 0.0  ;;  %v364_v28 = vsel %vm295_vm6, %v1193_v61, 0.0  ;;  %v566_v30 = vsel %vm497_vm7, %v1183_v57, 0.0 }
  0x9a   :  { %v428_v37 = vadd.f32 %v364_v28, %v227_v27  ;;  %v767_v42 = vsel %vm698_vm8, %v1186_v58, 0.0  ;;  %vm190_vm9 = vcmp.eq.s32.totalorder %v1685_v36, %v1188_v59  ;;  %vm327_vm10 = vcmp.eq.s32.totalorder %v1685_v36, %v1195_v63 }
  0x9b   :  { %915 = vmatpush.msra.mxu1 %v868_v26  ;;  %v259_v31 = vsel %vm190_vm9, %v1190_v60, 0.0  ;;  %v396_v32 = vsel %vm327_vm10, %v1193_v61, 0.0  ;;  %vm529_vm11 = vcmp.eq.s32.totalorder %v1685_v36, %v1219_v8  ;;  %vm730_vm12 = vcmp.eq.s32.totalorder %v1685_v36, %v1222_v9 }
  0x9c   :  { %v630_v33 = vadd.f32 %v566_v30, %v428_v37  ;;  %v460_v34 = vadd.f32 %v396_v32, %v259_v31  ;;  %v598_v44 = vsel %vm529_vm11, %v1183_v57, 0.0  ;;  %v799_v38 = vsel %vm730_vm12, %v1186_v58, 0.0 }
  0x9d   :  { %v367_v45 = vsel %vm298_vm3, %v1291_v6, 0.0  ;;  %v569_v46 = vsel %vm500_vm4, %v1297_v12, 0.0  ;;  %vm701_vm13 = vcmp.eq.s32.totalorder %v1559_v14, %v1300_v13  ;;  %vm193_vm14 = vcmp.eq.s32.totalorder %v1562_v54, %v1197_v0 }
  0x9e   :  { %v831_v47 = vadd.f32 %v767_v42, %v630_v33  ;;  %v662_v52 = vadd.f32 %v598_v44, %v460_v34  ;;  %v431_v53 = vadd.f32 %v367_v45, %v230_v22  ;;  %v770_v40 = vsel %vm701_vm13, %v1306_v15, 0.0 }
  0x9f   :  { %v262_v55 = vsel %vm193_vm14, %v1199_v1, 0.0  ;;  %vm330_vm15 = vcmp.eq.s32.totalorder %v1562_v54, %v1201_v2  ;;  %vm532_vm0 = vcmp.eq.s32.totalorder %v1562_v54, %v1294_v7  ;;  %vm733_vm1 = vcmp.eq.s32.totalorder %v1562_v54, %v1300_v13 }
  0xa0   :  { %941 = vmatpush.msra.mxu2 %v831_v47  ;;  %v863_v14 = vadd.f32 %v799_v38, %v662_v52  ;;  %v633_v5 = vadd.f32 %v569_v46, %v431_v53  ;;  %v399_v56 = vsel %vm330_vm15, %v1291_v6, 0.0  ;;  %v601_v62 = vsel %vm532_vm0, %v1297_v12, 0.0 }
  0xa1   :  { %v463_v11 = vadd.f32 %v399_v56, %v262_v55  ;;  %v802_v41 = vsel %vm733_vm1, %v1306_v15, 0.0  ;;  %v1742_v3 = vadd.s32 40, %v1150_v29  ;;  %v1745_v10 = vadd.s32 168, %v1150_v29 }
  0xa2   :  { %964 = vmatpush.msra.mxu3 %v863_v14  ;;  %v834_v48 = vadd.f32 %v770_v40, %v633_v5  ;;  %vm159_vm2 = vcmp.eq.s32.totalorder %v1619_v39, %v1197_v0  ;;  %vm296_vm3 = vcmp.eq.s32.totalorder %v1619_v39, %v1201_v2  ;;  %vm498_vm4 = vcmp.eq.s32.totalorder %v1619_v39, %v1294_v7 }
  0xa3   :  { %v665_v54 = vadd.f32 %v601_v62, %v463_v11  ;;  %vm156_vm5 = vcmp.eq.s32.totalorder %v1742_v3, %v1188_v59  ;;  %vm293_vm6 = vcmp.eq.s32.totalorder %v1742_v3, %v1195_v63  ;;  %vm495_vm7 = vcmp.eq.s32.totalorder %v1742_v3, %v1219_v8 }
  0xa4   :  { %893 = vmatpush.msra.mxu0 %v834_v48  ;;  %v225_v4 = vsel %vm156_vm5, %v1190_v60, 0.0  ;;  %v362_v16 = vsel %vm293_vm6, %v1193_v61, 0.0  ;;  %v564_v49 = vsel %vm495_vm7, %v1183_v57, 0.0  ;;  %vm696_vm8 = vcmp.eq.s32.totalorder %v1742_v3, %v1222_v9 }
  0xa5   :  { %v866_v50 = vadd.f32 %v802_v41, %v665_v54  ;;  %v426_v17 = vadd.f32 %v362_v16, %v225_v4  ;;  %v765_v18 = vsel %vm696_vm8, %v1186_v58, 0.0  ;;  %vm188_vm9 = vcmp.eq.s32.totalorder %v1745_v10, %v1188_v59 }
  0xa6   :  { %v257_v35 = vsel %vm188_vm9, %v1190_v60, 0.0  ;;  %vm325_vm10 = vcmp.eq.s32.totalorder %v1745_v10, %v1195_v63  ;;  %vm527_vm11 = vcmp.eq.s32.totalorder %v1745_v10, %v1219_v8  ;;  %vm728_vm12 = vcmp.eq.s32.totalorder %v1745_v10, %v1222_v9 }
  0xa7   :  { %916 = vmatpush.msra.mxu1 %v866_v50  ;;  %v628_v21 = vadd.f32 %v564_v49, %v426_v17  ;;  %v394_v19 = vsel %vm325_vm10, %v1193_v61, 0.0  ;;  %v596_v20 = vsel %vm527_vm11, %v1183_v57, 0.0  ;;  %v797_v23 = vsel %vm728_vm12, %v1186_v58, 0.0 }
  0xa8   :  { %v458_v51 = vadd.f32 %v394_v19, %v257_v35  ;;  %v228_v25 = vsel %vm159_vm2, %v1199_v1, 0.0  ;;  %v365_v22 = vsel %vm296_vm3, %v1291_v6, 0.0  ;;  %v567_v26 = vsel %vm498_vm4, %v1297_v12, 0.0 }
  0xa9   :  { %v829_v27 = vadd.f32 %v765_v18, %v628_v21  ;;  %v429_v28 = vadd.f32 %v365_v22, %v228_v25  ;;  %vm699_vm13 = vcmp.eq.s32.totalorder %v1619_v39, %v1300_v13  ;;  %vm191_vm14 = vcmp.eq.s32.totalorder %v1622_v43, %v1197_v0 }
  0xaa   :  { %v660_v30 = vadd.f32 %v596_v20, %v458_v51  ;;  %v768_v37 = vsel %vm699_vm13, %v1306_v15, 0.0  ;;  %v260_v42 = vsel %vm191_vm14, %v1199_v1, 0.0  ;;  %vm328_vm15 = vcmp.eq.s32.totalorder %v1622_v43, %v1201_v2 }
  0xab   :  { %942 = vmatpush.msra.mxu2 %v829_v27  ;;  %v631_v31 = vadd.f32 %v567_v26, %v429_v28  ;;  %v397_v32 = vsel %vm328_vm15, %v1291_v6, 0.0  ;;  %vm530_vm0 = vcmp.eq.s32.totalorder %v1622_v43, %v1294_v7  ;;  %vm731_vm1 = vcmp.eq.s32.totalorder %v1622_v43, %v1300_v13 }
  0xac   :  { %v861_v39 = vadd.f32 %v797_v23, %v660_v30  ;;  %v461_v33 = vadd.f32 %v397_v32, %v260_v42  ;;  %v599_v34 = vsel %vm530_vm0, %v1297_v12, 0.0  ;;  %v800_v44 = vsel %vm731_vm1, %v1306_v15, 0.0 }
  0xad   :  { %v832_v38 = vadd.f32 %v768_v37, %v631_v31  ;;  %v1805_v45 = vadd.s32 32, %v1150_v29  ;;  %v1808_v46 = vadd.s32 160, %v1150_v29  ;;  %vm157_vm2 = vcmp.eq.s32.totalorder %v1682_v24, %v1197_v0 }
  0xae   :  { %965 = vmatpush.msra.mxu3 %v861_v39  ;;  %v663_v47 = vadd.f32 %v599_v34, %v461_v33  ;;  %v226_v43 = vsel %vm157_vm2, %v1199_v1, 0.0  ;;  %vm294_vm3 = vcmp.eq.s32.totalorder %v1682_v24, %v1201_v2  ;;  %vm496_vm4 = vcmp.eq.s32.totalorder %v1682_v24, %v1294_v7 }
  0xaf   :  { %894 = vmatpush.msra.mxu0 %v832_v38  ;;  %vm154_vm5 = vcmp.eq.s32.totalorder %v1805_v45, %v1188_v59  ;;  %vm291_vm6 = vcmp.eq.s32.totalorder %v1805_v45, %v1195_v63  ;;  %vm493_vm7 = vcmp.eq.s32.totalorder %v1805_v45, %v1219_v8  ;;  %vm694_vm8 = vcmp.eq.s32.totalorder %v1805_v45, %v1222_v9 }
  0xb0   :  { %v864_v52 = vadd.f32 %v800_v44, %v663_v47  ;;  %v223_v53 = vsel %vm154_vm5, %v1190_v60, 0.0  ;;  %v360_v40 = vsel %vm291_vm6, %v1193_v61, 0.0  ;;  %v562_v55 = vsel %vm493_vm7, %v1183_v57, 0.0 }
  0xb1   :  { %v424_v14 = vadd.f32 %v360_v40, %v223_v53  ;;  %v763_v5 = vsel %vm694_vm8, %v1186_v58, 0.0  ;;  %vm186_vm9 = vcmp.eq.s32.totalorder %v1808_v46, %v1188_v59  ;;  %vm323_vm10 = vcmp.eq.s32.totalorder %v1808_v46, %v1195_v63 }
  0xb2   :  { %917 = vmatpush.msra.mxu1 %v864_v52  ;;  %v255_v56 = vsel %vm186_vm9, %v1190_v60, 0.0  ;;  %v392_v62 = vsel %vm323_vm10, %v1193_v61, 0.0  ;;  %vm525_vm11 = vcmp.eq.s32.totalorder %v1808_v46, %v1219_v8  ;;  %vm726_vm12 = vcmp.eq.s32.totalorder %v1808_v46, %v1222_v9 }
  0xb3   :  { %v626_v11 = vadd.f32 %v562_v55, %v424_v14  ;;  %v456_v41 = vadd.f32 %v392_v62, %v255_v56  ;;  %v594_v48 = vsel %vm525_vm11, %v1183_v57, 0.0  ;;  %v795_v54 = vsel %vm726_vm12, %v1186_v58, 0.0 }
  0xb4   :  { %v363_v4 = vsel %vm294_vm3, %v1291_v6, 0.0  ;;  %v565_v16 = vsel %vm496_vm4, %v1297_v12, 0.0  ;;  %vm697_vm13 = vcmp.eq.s32.totalorder %v1682_v24, %v1300_v13  ;;  %vm189_vm14 = vcmp.eq.s32.totalorder %v1685_v36, %v1197_v0 }
  0xb5   :  { %v827_v49 = vadd.f32 %v763_v5, %v626_v11  ;;  %v658_v50 = vadd.f32 %v594_v48, %v456_v41  ;;  %v427_v17 = vadd.f32 %v363_v4, %v226_v43  ;;  %v766_v18 = vsel %vm697_vm13, %v1306_v15, 0.0 }
  0xb6   :  { %v258_v35 = vsel %vm189_vm14, %v1199_v1, 0.0  ;;  %vm326_vm15 = vcmp.eq.s32.totalorder %v1685_v36, %v1201_v2  ;;  %vm528_vm0 = vcmp.eq.s32.totalorder %v1685_v36, %v1294_v7  ;;  %vm729_vm1 = vcmp.eq.s32.totalorder %v1685_v36, %v1300_v13 }
  0xb7   :  { %943 = vmatpush.msra.mxu2 %v827_v49  ;;  %v859_v24 = vadd.f32 %v795_v54, %v658_v50  ;;  %v629_v21 = vadd.f32 %v565_v16, %v427_v17  ;;  %v395_v19 = vsel %vm326_vm15, %v1291_v6, 0.0  ;;  %v597_v20 = vsel %vm528_vm0, %v1297_v12, 0.0 }
  0xb8   :  { %v459_v23 = vadd.f32 %v395_v19, %v258_v35  ;;  %v798_v51 = vsel %vm729_vm1, %v1306_v15, 0.0  ;;  %v1865_v25 = vadd.s32 24, %v1150_v29  ;;  %v1868_v22 = vadd.s32 152, %v1150_v29 }
  0xb9   :  { %966 = vmatpush.msra.mxu3 %v859_v24  ;;  %v830_v26 = vadd.f32 %v766_v18, %v629_v21  ;;  %vm155_vm2 = vcmp.eq.s32.totalorder %v1742_v3, %v1197_v0  ;;  %vm292_vm3 = vcmp.eq.s32.totalorder %v1742_v3, %v1201_v2  ;;  %vm494_vm4 = vcmp.eq.s32.totalorder %v1742_v3, %v1294_v7 }
  0xba   :  { %v661_v36 = vadd.f32 %v597_v20, %v459_v23  ;;  %vm152_vm5 = vcmp.eq.s32.totalorder %v1865_v25, %v1188_v59  ;;  %vm289_vm6 = vcmp.eq.s32.totalorder %v1865_v25, %v1195_v63  ;;  %vm491_vm7 = vcmp.eq.s32.totalorder %v1865_v25, %v1219_v8 }
  0xbb   :  { %895 = vmatpush.msra.mxu0 %v830_v26  ;;  %v221_v27 = vsel %vm152_vm5, %v1190_v60, 0.0  ;;  %v358_v28 = vsel %vm289_vm6, %v1193_v61, 0.0  ;;  %v560_v30 = vsel %vm491_vm7, %v1183_v57, 0.0  ;;  %vm692_vm8 = vcmp.eq.s32.totalorder %v1865_v25, %v1222_v9 }
  0xbc   :  { %v862_v37 = vadd.f32 %v798_v51, %v661_v36  ;;  %v422_v42 = vadd.f32 %v358_v28, %v221_v27  ;;  %v761_v31 = vsel %vm692_vm8, %v1186_v58, 0.0  ;;  %vm184_vm9 = vcmp.eq.s32.totalorder %v1868_v22, %v1188_v59 }
  0xbd   :  { %v253_v32 = vsel %vm184_vm9, %v1190_v60, 0.0  ;;  %vm321_vm10 = vcmp.eq.s32.totalorder %v1868_v22, %v1195_v63  ;;  %vm523_vm11 = vcmp.eq.s32.totalorder %v1868_v22, %v1219_v8  ;;  %vm724_vm12 = vcmp.eq.s32.totalorder %v1868_v22, %v1222_v9 }
  0xbe   :  { %918 = vmatpush.msra.mxu1 %v862_v37  ;;  %v624_v39 = vadd.f32 %v560_v30, %v422_v42  ;;  %v390_v33 = vsel %vm321_vm10, %v1193_v61, 0.0  ;;  %v592_v34 = vsel %vm523_vm11, %v1183_v57, 0.0  ;;  %v793_v44 = vsel %vm724_vm12, %v1186_v58, 0.0 }
  0xbf   :  { %v454_v38 = vadd.f32 %v390_v33, %v253_v32  ;;  %v224_v47 = vsel %vm155_vm2, %v1199_v1, 0.0  ;;  %v361_v43 = vsel %vm292_vm3, %v1291_v6, 0.0  ;;  %v563_v52 = vsel %vm494_vm4, %v1297_v12, 0.0 }
  0xc0   :  { %v825_v53 = vadd.f32 %v761_v31, %v624_v39  ;;  %v425_v40 = vadd.f32 %v361_v43, %v224_v47  ;;  %vm695_vm13 = vcmp.eq.s32.totalorder %v1742_v3, %v1300_v13  ;;  %vm187_vm14 = vcmp.eq.s32.totalorder %v1745_v10, %v1197_v0 }
  0xc1   :  { %v656_v55 = vadd.f32 %v592_v34, %v454_v38  ;;  %v764_v14 = vsel %vm695_vm13, %v1306_v15, 0.0  ;;  %v256_v5 = vsel %vm187_vm14, %v1199_v1, 0.0  ;;  %vm324_vm15 = vcmp.eq.s32.totalorder %v1745_v10, %v1201_v2 }
  0xc2   :  { %944 = vmatpush.msra.mxu2 %v825_v53  ;;  %v627_v56 = vadd.f32 %v563_v52, %v425_v40  ;;  %v393_v62 = vsel %vm324_vm15, %v1291_v6, 0.0  ;;  %vm526_vm0 = vcmp.eq.s32.totalorder %v1745_v10, %v1294_v7  ;;  %vm727_vm1 = vcmp.eq.s32.totalorder %v1745_v10, %v1300_v13 }
  0xc3   :  { %v857_v3 = vadd.f32 %v793_v44, %v656_v55  ;;  %v457_v11 = vadd.f32 %v393_v62, %v256_v5  ;;  %v595_v41 = vsel %vm526_vm0, %v1297_v12, 0.0  ;;  %v796_v48 = vsel %vm727_vm1, %v1306_v15, 0.0 }
  0xc4   :  { %v828_v54 = vadd.f32 %v764_v14, %v627_v56  ;;  %v1928_v4 = vadd.s32 16, %v1150_v29  ;;  %v1931_v16 = vadd.s32 144, %v1150_v29  ;;  %vm153_vm2 = vcmp.eq.s32.totalorder %v1805_v45, %v1197_v0 }
  0xc5   :  { %967 = vmatpush.msra.mxu3 %v857_v3  ;;  %v659_v49 = vadd.f32 %v595_v41, %v457_v11  ;;  %v222_v10 = vsel %vm153_vm2, %v1199_v1, 0.0  ;;  %vm290_vm3 = vcmp.eq.s32.totalorder %v1805_v45, %v1201_v2  ;;  %vm492_vm4 = vcmp.eq.s32.totalorder %v1805_v45, %v1294_v7 }
  0xc6   :  { %896 = vmatpush.msra.mxu0 %v828_v54  ;;  %vm150_vm5 = vcmp.eq.s32.totalorder %v1928_v4, %v1188_v59  ;;  %vm287_vm6 = vcmp.eq.s32.totalorder %v1928_v4, %v1195_v63  ;;  %vm489_vm7 = vcmp.eq.s32.totalorder %v1928_v4, %v1219_v8  ;;  %vm690_vm8 = vcmp.eq.s32.totalorder %v1928_v4, %v1222_v9 }
  0xc7   :  { %v860_v50 = vadd.f32 %v796_v48, %v659_v49  ;;  %v219_v17 = vsel %vm150_vm5, %v1190_v60, 0.0  ;;  %v356_v18 = vsel %vm287_vm6, %v1193_v61, 0.0  ;;  %v558_v35 = vsel %vm489_vm7, %v1183_v57, 0.0 }
  0xc8   :  { %v420_v24 = vadd.f32 %v356_v18, %v219_v17  ;;  %v759_v21 = vsel %vm690_vm8, %v1186_v58, 0.0  ;;  %vm182_vm9 = vcmp.eq.s32.totalorder %v1931_v16, %v1188_v59  ;;  %vm319_vm10 = vcmp.eq.s32.totalorder %v1931_v16, %v1195_v63 }
  0xc9   :  { %919 = vmatpush.msra.mxu1 %v860_v50  ;;  %v251_v19 = vsel %vm182_vm9, %v1190_v60, 0.0  ;;  %v388_v20 = vsel %vm319_vm10, %v1193_v61, 0.0  ;;  %vm521_vm11 = vcmp.eq.s32.totalorder %v1931_v16, %v1219_v8  ;;  %vm722_vm12 = vcmp.eq.s32.totalorder %v1931_v16, %v1222_v9 }
  0xca   :  { %v622_v23 = vadd.f32 %v558_v35, %v420_v24  ;;  %v452_v51 = vadd.f32 %v388_v20, %v251_v19  ;;  %v590_v26 = vsel %vm521_vm11, %v1183_v57, 0.0  ;;  %v791_v36 = vsel %vm722_vm12, %v1186_v58, 0.0 }
  0xcb   :  { %v359_v27 = vsel %vm290_vm3, %v1291_v6, 0.0  ;;  %v561_v28 = vsel %vm492_vm4, %v1297_v12, 0.0  ;;  %vm693_vm13 = vcmp.eq.s32.totalorder %v1805_v45, %v1300_v13  ;;  %vm185_vm14 = vcmp.eq.s32.totalorder %v1808_v46, %v1197_v0 }
  0xcc   :  { %v823_v30 = vadd.f32 %v759_v21, %v622_v23  ;;  %v654_v37 = vadd.f32 %v590_v26, %v452_v51  ;;  %v423_v42 = vadd.f32 %v359_v27, %v222_v10  ;;  %v762_v31 = vsel %vm693_vm13, %v1306_v15, 0.0 }
  0xcd   :  { %v254_v32 = vsel %vm185_vm14, %v1199_v1, 0.0  ;;  %vm322_vm15 = vcmp.eq.s32.totalorder %v1808_v46, %v1201_v2  ;;  %vm524_vm0 = vcmp.eq.s32.totalorder %v1808_v46, %v1294_v7  ;;  %vm725_vm1 = vcmp.eq.s32.totalorder %v1808_v46, %v1300_v13 }
  0xce   :  { %945 = vmatpush.msra.mxu2 %v823_v30  ;;  %v855_v45 = vadd.f32 %v791_v36, %v654_v37  ;;  %v625_v39 = vadd.f32 %v561_v28, %v423_v42  ;;  %v391_v33 = vsel %vm322_vm15, %v1291_v6, 0.0  ;;  %v593_v34 = vsel %vm524_vm0, %v1297_v12, 0.0 }
  0xcf   :  { %v455_v44 = vadd.f32 %v391_v33, %v254_v32  ;;  %v794_v38 = vsel %vm725_vm1, %v1306_v15, 0.0  ;;  %v1988_v47 = vadd.s32 8, %v1150_v29  ;;  %v1991_v43 = vadd.s32 136, %v1150_v29 }
  0xd0   :  { %968 = vmatpush.msra.mxu3 %v855_v45  ;;  %v826_v52 = vadd.f32 %v762_v31, %v625_v39  ;;  %vm151_vm2 = vcmp.eq.s32.totalorder %v1865_v25, %v1197_v0  ;;  %vm288_vm3 = vcmp.eq.s32.totalorder %v1865_v25, %v1201_v2  ;;  %vm490_vm4 = vcmp.eq.s32.totalorder %v1865_v25, %v1294_v7 }
  0xd1   :  { %v657_v46 = vadd.f32 %v593_v34, %v455_v44  ;;  %vm148_vm5 = vcmp.eq.s32.totalorder %v1988_v47, %v1188_v59  ;;  %vm285_vm6 = vcmp.eq.s32.totalorder %v1988_v47, %v1195_v63  ;;  %vm487_vm7 = vcmp.eq.s32.totalorder %v1988_v47, %v1219_v8 }
  0xd2   :  { %897 = vmatpush.msra.mxu0 %v826_v52  ;;  %v217_v53 = vsel %vm148_vm5, %v1190_v60, 0.0  ;;  %v354_v40 = vsel %vm285_vm6, %v1193_v61, 0.0  ;;  %v556_v55 = vsel %vm487_vm7, %v1183_v57, 0.0  ;;  %vm688_vm8 = vcmp.eq.s32.totalorder %v1988_v47, %v1222_v9 }
  0xd3   :  { %v858_v14 = vadd.f32 %v794_v38, %v657_v46  ;;  %v418_v5 = vadd.f32 %v354_v40, %v217_v53  ;;  %v757_v56 = vsel %vm688_vm8, %v1186_v58, 0.0  ;;  %vm180_vm9 = vcmp.eq.s32.totalorder %v1991_v43, %v1188_v59  ;;  %v2082_v46 = vld [vmem:[#allocation6] sm:$0xff] }
  0xd4   :  { %v249_v62 = vsel %vm180_vm9, %v1190_v60, 0.0  ;;  %vm317_vm10 = vcmp.eq.s32.totalorder %v1991_v43, %v1195_v63  ;;  %vm519_vm11 = vcmp.eq.s32.totalorder %v1991_v43, %v1219_v8  ;;  %vm720_vm12 = vcmp.eq.s32.totalorder %v1991_v43, %v1222_v9 }
  0xd5   :  { %920 = vmatpush.msra.mxu1 %v858_v14  ;;  %v620_v3 = vadd.f32 %v556_v55, %v418_v5  ;;  %v386_v11 = vsel %vm317_vm10, %v1193_v61, 0.0  ;;  %v588_v41 = vsel %vm519_vm11, %v1183_v57, 0.0  ;;  %v789_v48 = vsel %vm720_vm12, %v1186_v58, 0.0 }
  0xd6   :  { %v450_v54 = vadd.f32 %v386_v11, %v249_v62  ;;  %v220_v49 = vsel %vm151_vm2, %v1199_v1, 0.0  ;;  %v357_v10 = vsel %vm288_vm3, %v1291_v6, 0.0  ;;  %v559_v50 = vsel %vm490_vm4, %v1297_v12, 0.0 }
  0xd7   :  { %v821_v17 = vadd.f32 %v757_v56, %v620_v3  ;;  %v421_v18 = vadd.f32 %v357_v10, %v220_v49  ;;  %vm691_vm13 = vcmp.eq.s32.totalorder %v1865_v25, %v1300_v13  ;;  %vm183_vm14 = vcmp.eq.s32.totalorder %v1868_v22, %v1197_v0 }
  0xd8   :  { %v652_v35 = vadd.f32 %v588_v41, %v450_v54  ;;  %v760_v24 = vsel %vm691_vm13, %v1306_v15, 0.0  ;;  %v252_v21 = vsel %vm183_vm14, %v1199_v1, 0.0  ;;  %vm320_vm15 = vcmp.eq.s32.totalorder %v1868_v22, %v1201_v2 }
  0xd9   :  { %946 = vmatpush.msra.mxu2 %v821_v17  ;;  %v623_v19 = vadd.f32 %v559_v50, %v421_v18  ;;  %v389_v20 = vsel %vm320_vm15, %v1291_v6, 0.0  ;;  %vm522_vm0 = vcmp.eq.s32.totalorder %v1868_v22, %v1294_v7  ;;  %vm723_vm1 = vcmp.eq.s32.totalorder %v1868_v22, %v1300_v13 }
  0xda   :  { %v853_v25 = vadd.f32 %v789_v48, %v652_v35  ;;  %v453_v23 = vadd.f32 %v389_v20, %v252_v21  ;;  %v591_v51 = vsel %vm522_vm0, %v1297_v12, 0.0  ;;  %v792_v26 = vsel %vm723_vm1, %v1306_v15, 0.0 }
  0xdb   :  { %v824_v36 = vadd.f32 %v760_v24, %v623_v19  ;;  %vm146_vm2 = vcmp.eq.s32.totalorder %v1150_v29, %v1188_v59  ;;  %vm283_vm3 = vcmp.eq.s32.totalorder %v1150_v29, %v1195_v63  ;;  %vm485_vm4 = vcmp.eq.s32.totalorder %v1150_v29, %v1219_v8 }
  0xdc   :  { %969 = vmatpush.msra.mxu3 %v853_v25  ;;  %v655_v27 = vadd.f32 %v591_v51, %v453_v23  ;;  %v215_v22 = vsel %vm146_vm2, %v1190_v60, 0.0  ;;  %v352_v28 = vsel %vm283_vm3, %v1193_v61, 0.0  ;;  %v554_v30 = vsel %vm485_vm4, %v1183_v57, 0.0  ;;  %v885_v25 = vld [vmem:[#allocation6 + $0x18] sm:$0x3] }
  0xdd   :  { %898 = vmatpush.msra.mxu0 %v824_v36  ;;  %v416_v37 = vadd.f32 %v352_v28, %v215_v22  ;;  %vm686_vm5 = vcmp.eq.s32.totalorder %v1150_v29, %v1222_v9  ;;  %v2062_v42 = vadd.s32 128, %v1150_v29  ;;  %vm149_vm6 = vcmp.eq.s32.totalorder %v1928_v4, %v1197_v0 }
  0xde   :  { %v856_v31 = vadd.f32 %v792_v26, %v655_v27  ;;  %v755_v32 = vsel %vm686_vm5, %v1186_v58, 0.0  ;;  %v218_v45 = vsel %vm149_vm6, %v1199_v1, 0.0  ;;  %vm286_vm7 = vcmp.eq.s32.totalorder %v1928_v4, %v1201_v2 }
  0xdf   :  { %v618_v39 = vadd.f32 %v554_v30, %v416_v37  ;;  %vm178_vm8 = vcmp.eq.s32.totalorder %v2062_v42, %v1188_v59  ;;  %vm315_vm9 = vcmp.eq.s32.totalorder %v2062_v42, %v1195_v63  ;;  %vm517_vm10 = vcmp.eq.s32.totalorder %v2062_v42, %v1219_v8 }
  0xe0   :  { %921 = vmatpush.msra.mxu1 %v856_v31  ;;  %v247_v33 = vsel %vm178_vm8, %v1190_v60, 0.0  ;;  %v384_v34 = vsel %vm315_vm9, %v1193_v61, 0.0  ;;  %v586_v44 = vsel %vm517_vm10, %v1183_v57, 0.0  ;;  %vm718_vm11 = vcmp.eq.s32.totalorder %v2062_v42, %v1222_v9 }
  0xe1   :  { %v819_v38 = vadd.f32 %v755_v32, %v618_v39  ;;  %v448_v52 = vadd.f32 %v384_v34, %v247_v33  ;;  %v787_v59 = vsel %vm718_vm11, %v1186_v58, 0.0  ;;  %v355_v63 = vsel %vm286_vm7, %v1291_v6, 0.0 }
  0xe2   :  { %v419_v53 = vadd.f32 %v355_v63, %v218_v45  ;;  %vm488_vm12 = vcmp.eq.s32.totalorder %v1928_v4, %v1294_v7  ;;  %vm689_vm13 = vcmp.eq.s32.totalorder %v1928_v4, %v1300_v13  ;;  %vm181_vm14 = vcmp.eq.s32.totalorder %v1931_v16, %v1197_v0  ;;  %v2101_v4 = vld [vmem:[#allocation6 + $0x8] sm:$0xff] }
  0xe3   :  { %947 = vmatpush.msra.mxu2 %v819_v38  ;;  %v650_v57 = vadd.f32 %v586_v44, %v448_v52  ;;  %v557_v60 = vsel %vm488_vm12, %v1297_v12, 0.0  ;;  %v758_v58 = vsel %vm689_vm13, %v1306_v15, 0.0  ;;  %v250_v61 = vsel %vm181_vm14, %v1199_v1, 0.0 }
  0xe4   :  { %948 = vmatmul.f32.vlgmr.msra.gmra.mxu2 %v2082_v46  ;;  %v621_v8 = vadd.f32 %v557_v60, %v419_v53  ;;  %vm318_vm15 = vcmp.eq.s32.totalorder %v1931_v16, %v1201_v2  ;;  %vm520_vm0 = vcmp.eq.s32.totalorder %v1931_v16, %v1294_v7  ;;  %vm721_vm1 = vcmp.eq.s32.totalorder %v1931_v16, %v1300_v13 }
  0xe5   :  { %v851_v9 = vadd.f32 %v787_v59, %v650_v57  ;;  %v387_v40 = vsel %vm318_vm15, %v1291_v6, 0.0  ;;  %v589_v55 = vsel %vm520_vm0, %v1297_v12, 0.0  ;;  %v790_v14 = vsel %vm721_vm1, %v1306_v15, 0.0 }
  0xe6   :  { %v822_v5 = vadd.f32 %v758_v58, %v621_v8  ;;  %v451_v56 = vadd.f32 %v387_v40, %v250_v61  ;;  %vm147_vm2 = vcmp.eq.s32.totalorder %v1988_v47, %v1197_v0  ;;  %vm284_vm3 = vcmp.eq.s32.totalorder %v1988_v47, %v1201_v2 }
  0xe7   :  { %970 = vmatpush.msra.mxu3 %v851_v9  ;;  %v216_v16 = vsel %vm147_vm2, %v1199_v1, 0.0  ;;  %v353_v62 = vsel %vm284_vm3, %v1291_v6, 0.0  ;;  %vm486_vm4 = vcmp.eq.s32.totalorder %v1988_v47, %v1294_v7  ;;  %vm687_vm5 = vcmp.eq.s32.totalorder %v1988_v47, %v1300_v13  ;;  %v884_v47 = vld [vmem:[#allocation6 + $0x10] sm:$0x3] }
  0xe8   :  { %971 = vmatmul.f32.vlgmr.msra.gmra.mxu3 %v2101_v4  ;;  %899 = vmatpush.msra.mxu0 %v822_v5  ;;  %v653_v3 = vadd.f32 %v589_v55, %v451_v56  ;;  %v417_v11 = vadd.f32 %v353_v62, %v216_v16  ;;  %v555_v41 = vsel %vm486_vm4, %v1297_v12, 0.0  ;;  %v756_v48 = vsel %vm687_vm5, %v1306_v15, 0.0 }
  0xe9   :  { %vm179_vm6 = vcmp.eq.s32.totalorder %v1991_v43, %v1197_v0  ;;  %vm316_vm7 = vcmp.eq.s32.totalorder %v1991_v43, %v1201_v2  ;;  %vm518_vm8 = vcmp.eq.s32.totalorder %v1991_v43, %v1294_v7  ;;  %vm719_vm9 = vcmp.eq.s32.totalorder %v1991_v43, %v1300_v13 }
  0xea   :  { %v854_v54 = vadd.f32 %v790_v14, %v653_v3  ;;  %v619_v49 = vadd.f32 %v555_v41, %v417_v11  ;;  %v248_v10 = vsel %vm179_vm6, %v1199_v1, 0.0  ;;  %v385_v50 = vsel %vm316_vm7, %v1291_v6, 0.0 }
  0xeb   :  { %v449_v17 = vadd.f32 %v385_v50, %v248_v10  ;;  %v587_v18 = vsel %vm518_vm8, %v1297_v12, 0.0  ;;  %v788_v35 = vsel %vm719_vm9, %v1306_v15, 0.0  ;;  %vm145_vm10 = vcmp.eq.s32.totalorder %v1150_v29, %v1197_v0 }
  0xec   :  { %922 = vmatpush.msra.mxu1 %v854_v54  ;;  %v820_v24 = vadd.f32 %v756_v48, %v619_v49  ;;  %v214_v21 = vsel %vm145_vm10, %v1199_v1, 0.0  ;;  %vm282_vm11 = vcmp.eq.s32.totalorder %v1150_v29, %v1201_v2  ;;  %vm484_vm12 = vcmp.eq.s32.totalorder %v1150_v29, %v1294_v7  ;;  %951 = vmatmul.f32.gmra.mxu2 %v884_v47 }
  0xed   :  { %v651_v43 = vadd.f32 %v587_v18, %v449_v17  ;;  %v351_v19 = vsel %vm282_vm11, %v1291_v6, 0.0  ;;  %v553_v20 = vsel %vm484_vm12, %v1297_v12, 0.0  ;;  %vm685_vm13 = vcmp.eq.s32.totalorder %v1150_v29, %v1300_v13 }
  0xee   :  { %900 = vmatpush.msra.mxu0 %v820_v24  ;;  %v415_v23 = vadd.f32 %v351_v19, %v214_v21  ;;  %v754_v51 = vsel %vm685_vm13, %v1306_v15, 0.0  ;;  %vm177_vm14 = vcmp.eq.s32.totalorder %v2062_v42, %v1197_v0  ;;  %vm314_vm15 = vcmp.eq.s32.totalorder %v2062_v42, %v1201_v2 }
  0xef   :  { %v852_v26 = vadd.f32 %v788_v35, %v651_v43  ;;  %v246_v36 = vsel %vm177_vm14, %v1199_v1, 0.0  ;;  %v383_v27 = vsel %vm314_vm15, %v1291_v6, 0.0  ;;  %vm516_vm0 = vcmp.eq.s32.totalorder %v2062_v42, %v1294_v7 }
  0xf0   :  { %v617_v29 = vadd.f32 %v553_v20, %v415_v23  ;;  %v447_v22 = vadd.f32 %v383_v27, %v246_v36  ;;  %v585_v28 = vsel %vm516_vm0, %v1297_v12, 0.0  ;;  %vm717_vm1 = vcmp.eq.s32.totalorder %v2062_v42, %v1300_v13  ;;  %974 = vmatmul.f32.gmra.mxu3 %v885_v25 }
  0xf1   :  { %923 = vmatpush.msra.mxu1 %v852_v26  ;;  %v786_v0 = vsel %vm717_vm1, %v1306_v15, 0.0 }
  0xf2   :  { %v818_v2 = vadd.f32 %v754_v51, %v617_v29  ;;  %v649_v30 = vadd.f32 %v585_v28, %v447_v22 }
  0xf4   :  { %901 = vmatpush.msra.mxu0 %v818_v2  ;;  %v850_v1 = vadd.f32 %v786_v0, %v649_v30 }
  0xf5   :  { %902 = vmatmul.f32.vlgmr.msra.gmra.mxu0 %v2082_v46 }
  0xf6   :  { %924 = vmatpush.msra.mxu1 %v850_v1 }
  0xf7   :  { %925 = vmatmul.f32.vlgmr.msra.gmra.mxu1 %v2101_v4 }
  0xfd   :  { %905 = vmatmul.f32.gmra.mxu0 %v884_v47 }
  0xff   :  { %928 = vmatmul.f32.gmra.mxu1 %v885_v25 }
 0x167   :  { %v949_v6 = vpop.f32.mrf.mxu2 }
 0x16b   :  { %v972_v7 = vpop.f32.mrf.mxu3 }
 0x16c   :  { %v973_v12 = vadd.f32 %v972_v7, %v949_v6 }
 0x16e   :  { %979 = vst [vmem:[#allocation9 + $0x8] sm:$0xff] %v973_v12 }
 0x16f   :  { %v952_v13 = vpop.f32.mrf.mxu2 }
 0x172   :  { %v903_v37 = vpop.f32.mrf.mxu0 }
 0x173   :  { %v975_v42 = vpop.f32.mrf.mxu3 }
 0x174   :  { %v926_v31 = vpop.f32.mrf.mxu1  ;;  %v976_v15 = vadd.f32 %v975_v42, %v952_v13 }
 0x175   :  { %v927_v32 = vadd.f32 %v926_v31, %v903_v37 }
 0x176   :  { %981 = vst [vmem:[#allocation9 + $0x18] sm:$0x3] %v976_v15 }
 0x177   :  { %978 = vst [vmem:[#allocation9] sm:$0xff] %v927_v32 }
 0x17a   :  { %v906_v45 = vpop.f32.mrf.mxu0 }
 0x17c   :  { %v929_v39 = vpop.f32.mrf.mxu1 }
 0x17d   :  { %v930_v33 = vadd.f32 %v929_v39, %v906_v45 }
 0x17f   :  { %980 = vst [vmem:[#allocation9 + $0x10] sm:$0x3] %v930_v33 }
 0x180   :  { %994 = dma.vmem_to_hbm [thread:$0]  %s987_s5, 512, %s989_s8, [#allocation4], %s1114_s21, %s1114_s21, %s1115_s22  }
 0x181   :  { %1110 = dma.done.wait [#allocation4], 512  }
 0x182   :  { %1111 = vsyncadd [#allocation4], 4294966784 }
 0x183   :  { %999 = vsyncpa [#allocation3], 1 }
 0x184   :  { %1000 = vsyncpa [#allocation8], 1 }
 0x185   :  { %1001 = vsyncpa [#allocation4], 1 }
 0x186   :  { %1002 = vsyncpa [#allocation5], 1 }

</bundles_post_ra>
